<compile_context>
chip_gen: v7x
topology: tpu7x:2x2x1
jax: 0.10.0
libtpu: 0.0.40
codegen_flags: <defaults>
</compile_context>

<pallas_src>
import functools

import jax
import jax.numpy as jnp
from jax import lax
from jax.experimental import pallas as pl
from jax.experimental.pallas import tpu as pltpu


def _netd_kernel(x_ref,
                 w_ih_e_ref, w_hh_e_ref, b_gi_e_ref, b_hn_e_ref,
                 w_ih_d_ref, w_hh_d_ref, b_gi_d_ref, b_hn_d_ref,
                 enc_out_ref, dec_out_ref,
                 *, T, B):
    H = w_hh_e_ref.shape[0]      # encoder hidden dim
    D = w_hh_d_ref.shape[0]      # decoder hidden dim == var_dim
    f32 = jnp.float32

    # Hoist all weight loads / bias broadcasts out of the unrolled loop
    # (JAX does not CSE broadcast_in_dim, so broadcast once here).
    w_ih_e = w_ih_e_ref[...]
    w_hh_e = w_hh_e_ref[...]
    w_ih_d = w_ih_d_ref[...]
    w_hh_d = w_hh_d_ref[...]
    b_gi_d = jnp.broadcast_to(b_gi_d_ref[...], (B, 3 * D))
    b_hn_e = jnp.broadcast_to(b_hn_e_ref[...], (B, H))
    b_hn_d = jnp.broadcast_to(b_hn_d_ref[...], (B, D))

    # Hoisted encoder input projection: one (T*B, Din) @ (Din, 3H) MXU pass.
    # b_ih + the r/z thirds of b_hh are already folded into b_gi_e.
    gi_enc = jnp.dot(x_ref[...], w_ih_e,
                     preferred_element_type=f32) + b_gi_e_ref[...]   # (T*B, 3H)

    def cell(gi_t, gh, b_hn, h, hid):
        # PyTorch GRU gate order (r, z, n); r/z share one fused sigmoid.
        # gi_t already contains b_ih + b_hh[r,z]; gh = h @ W_hh (no bias).
        s = jax.nn.sigmoid(gi_t[:, :2 * hid] + gh[:, :2 * hid])
        r = s[:, :hid]
        z = s[:, hid:]
        n = jnp.tanh(gi_t[:, 2 * hid:] + r * (gh[:, 2 * hid:] + b_hn))
        return (1.0 - z) * n + z * h

    def cell0(gi_t, b_hn, hid):
        # First step: h == 0  =>  h @ W_hh == 0 and z*h == 0 (skip the matmul).
        s = jax.nn.sigmoid(gi_t[:, :2 * hid])
        r = s[:, :hid]
        z = s[:, hid:]
        n = jnp.tanh(gi_t[:, 2 * hid:] + r * b_hn)
        return (1.0 - z) * n

    # ---- interleaved encoder/decoder recurrence (fully unrolled, static T) --
    h = cell0(gi_enc[0:B, :], b_hn_e, H)                       # enc step 0
    gi_d = jnp.dot(h, w_ih_d, preferred_element_type=f32) + b_gi_d
    hd = cell0(gi_d, b_hn_d, D)                                # dec step 0
    enc_cols = [h]
    dec_cols = [hd]
    for t in range(1, T):
        # Encoder serial chain.
        gh_e = jnp.dot(h, w_hh_e, preferred_element_type=f32)
        h = cell(gi_enc[t * B:(t + 1) * B, :], gh_e, b_hn_e, h, H)
        enc_cols.append(h)
        # Decoder serial chain, interleaved into the encoder's latency bubbles:
        # gh_d only needs hd_{t-1} (overlaps with the encoder step above),
        # gi_d only needs the fresh enc h_t.
        gh_d = jnp.dot(hd, w_hh_d, preferred_element_type=f32)
        gi_d = jnp.dot(h, w_ih_d, preferred_element_type=f32) + b_gi_d
        hd = cell(gi_d, gh_d, b_hn_d, hd, D)
        dec_cols.append(hd)

    # Lane-dense slab stores: encoder slab (B, T*H) is whole 128-lane vregs,
    # decoder slab (B, T*D) is a single store.  Wrapper unpacks with a reshape.
    enc_out_ref[...] = jnp.concatenate(enc_cols, axis=1).astype(enc_out_ref.dtype)
    dec_out_ref[...] = jnp.concatenate(dec_cols, axis=1).astype(dec_out_ref.dtype)


def _netd_forward_impl(X, params, *, b_blk=8):
    """X: (B, T, var_dim).  Returns (X_enc (B,T,H), X_dec (B,T,var_dim))."""
    B, T, Dv = X.shape
    H = params["w_hh_enc"].shape[0]

    # Pad batch to a multiple of the per-block sublane tile (8).
    B_pad = ((B + b_blk - 1) // b_blk) * b_blk
    if B_pad != B:
        X = jnp.concatenate(
            [X, jnp.zeros((B_pad - B, T, Dv), X.dtype)], axis=0)
    n_blk = B_pad // b_blk

    # Per-block time-major slab: row t*b_blk + i  <->  (batch blk*b_blk + i, time t).
    x_blk = (X.reshape(n_blk, b_blk, T, Dv)
              .transpose(0, 2, 1, 3)
              .reshape(n_blk, T * b_blk, Dv)).astype(jnp.float32)

    # Fold the r/z thirds of b_hh into the hoisted gi bias (free, one-time).
    b_hh_e = params["b_hh_enc"]
    b_gi_e = params["b_ih_enc"] + jnp.concatenate(
        [b_hh_e[:, :2 * H], jnp.zeros_like(b_hh_e[:, 2 * H:])], axis=1)
    b_hn_e = b_hh_e[:, 2 * H:]
    b_hh_d = params["b_hh_dec"]
    b_gi_d = params["b_ih_dec"] + jnp.concatenate(
        [b_hh_d[:, :2 * Dv], jnp.zeros_like(b_hh_d[:, 2 * Dv:])], axis=1)
    b_hn_d = b_hh_d[:, 2 * Dv:]

    inputs = (x_blk,
              params["w_ih_enc"], params["w_hh_enc"], b_gi_e, b_hn_e,
              params["w_ih_dec"], params["w_hh_dec"], b_gi_d, b_hn_d)

    def full_spec(a):
        nd = a.ndim
        return pl.BlockSpec(a.shape, lambda i, _nd=nd: (0,) * _nd)

    enc_out, dec_out = pl.pallas_call(
        functools.partial(_netd_kernel, T=T, B=b_blk),
        grid=(n_blk,),
        in_specs=[pl.BlockSpec((None, T * b_blk, Dv), lambda i: (i, 0, 0))]
                + [full_spec(a) for a in inputs[1:]],
        out_specs=(pl.BlockSpec((None, b_blk, T * H), lambda i: (i, 0, 0)),
                   pl.BlockSpec((None, b_blk, T * Dv), lambda i: (i, 0, 0))),
        out_shape=(jax.ShapeDtypeStruct((n_blk, b_blk, T * H), jnp.float32),
                   jax.ShapeDtypeStruct((n_blk, b_blk, T * Dv), jnp.float32)),
        compiler_params=pltpu.CompilerParams(
            dimension_semantics=("parallel",)),
    )(*inputs)

    # Lane-dense slabs unpack with a free reshape (no output transposes).
    X_enc = enc_out.reshape(B_pad, T, H)[:B]
    X_dec = dec_out.reshape(B_pad, T, Dv)[:B]
    return X_enc, X_dec


netd_forward = jax.jit(_netd_forward_impl)


# ------------------------- pure-JAX reference ------------------------------
def _gru_ref(x_seq, h0, w_ih, w_hh, b_ih, b_hh):
    H = h0.shape[-1]

    def step(h, x_t):
        gi = x_t @ w_ih + b_ih
        gh = h @ w_hh + b_hh
        r = jax.nn.sigmoid(gi[:, :H] + gh[:, :H])
        z = jax.nn.sigmoid(gi[:, H:2 * H] + gh[:, H:2 * H])
        n = jnp.tanh(gi[:, 2 * H:] + r * gh[:, 2 * H:])
        h_new = (1.0 - z) * n + z * h
        return h_new, h_new

    h_last, ys = lax.scan(step, h0, jnp.transpose(x_seq, (1, 0, 2)))
    return jnp.transpose(ys, (1, 0, 2)), h_last


def netd_forward_ref(X, p):
    B, T, D = X.shape
    H = p["w_hh_enc"].shape[0]
    X_enc, _ = _gru_ref(X, jnp.zeros((B, H), jnp.float32),
                        p["w_ih_enc"], p["w_hh_enc"],
                        p["b_ih_enc"], p["b_hh_enc"])
    X_dec, _ = _gru_ref(X_enc, jnp.zeros((B, D), jnp.float32),
                        p["w_ih_dec"], p["w_hh_dec"],
                        p["b_ih_dec"], p["b_hh_dec"])
    return X_enc, X_dec


# ------------------------- parameter init ----------------------------------
def init_params(key, var_dim, hid_dim):
    # PyTorch GRU default init: U(-1/sqrt(hidden_size), 1/sqrt(hidden_size)).
    ke = 1.0 / jnp.sqrt(jnp.float32(hid_dim))   # encoder GRU hidden = hid_dim
    kd = 1.0 / jnp.sqrt(jnp.float32(var_dim))   # decoder GRU hidden = var_dim
    keys = jax.random.split(key, 8)

    def u(k_, shape, bound):
        return jax.random.uniform(k_, shape, jnp.float32, -bound, bound)

    return {
        # encoder GRU (stored transposed: x @ W), gate order (r, z, n)
        "w_ih_enc": u(keys[0], (var_dim, 3 * hid_dim), ke),
        "w_hh_enc": u(keys[1], (hid_dim, 3 * hid_dim), ke),
        "b_ih_enc": u(keys[2], (1, 3 * hid_dim), ke),
        "b_hh_enc": u(keys[3], (1, 3 * hid_dim), ke),
        # decoder GRU (input H -> hidden var_dim)
        "w_ih_dec": u(keys[4], (hid_dim, 3 * var_dim), kd),
        "w_hh_dec": u(keys[5], (var_dim, 3 * var_dim), kd),
        "b_ih_dec": u(keys[6], (1, 3 * var_dim), kd),
        "b_hh_dec": u(keys[7], (1, 3 * var_dim), kd),
    }


if __name__ == "__main__":
    B, T, VAR_DIM, HID = 4, 8, 8, 32   # batch, wnd_dim, var_dim, RNN_hid_dim

    key = jax.random.PRNGKey(0)
    k_x, k_par = jax.random.split(key, 2)

    X = jax.random.normal(k_x, (B, T, VAR_DIM), jnp.float32)
    params = init_params(k_par, VAR_DIM, HID)

    X_enc, X_dec = netd_forward(X, params)
    X_enc = jax.block_until_ready(X_enc)
    X_dec = jax.block_until_ready(X_dec)

    X_enc_ref, X_dec_ref = netd_forward_ref(X, params)
    X_enc_ref = jax.block_until_ready(X_enc_ref)
    X_dec_ref = jax.block_until_ready(X_dec_ref)

    assert X_enc.shape == (B, T, HID)
    assert X_dec.shape == (B, T, VAR_DIM)
    assert jnp.allclose(X_enc, X_enc_ref, atol=1e-5, rtol=1e-5), "X_enc mismatch"
    assert jnp.allclose(X_dec, X_dec_ref, atol=1e-5, rtol=1e-5), "X_dec mismatch"

    print("KERNEL_OK")
</pallas_src>

<mosaic_0001>
module attributes {stable_mosaic.version = 11 : i64} {
  func.func @_netd_kernel(%arg0: i32, %arg1: memref<1x64x8xf32, #tpu.memory_space<vmem>>, %arg2: memref<8x96xf32, #tpu.memory_space<vmem>>, %arg3: memref<32x96xf32, #tpu.memory_space<vmem>>, %arg4: memref<1x96xf32, #tpu.memory_space<vmem>>, %arg5: memref<1x32xf32, #tpu.memory_space<vmem>>, %arg6: memref<32x24xf32, #tpu.memory_space<vmem>>, %arg7: memref<8x24xf32, #tpu.memory_space<vmem>>, %arg8: memref<1x24xf32, #tpu.memory_space<vmem>>, %arg9: memref<1x8xf32, #tpu.memory_space<vmem>>, %arg10: memref<1x8x256xf32, #tpu.memory_space<vmem>>, %arg11: memref<1x8x64xf32, #tpu.memory_space<vmem>>) attributes {dimension_semantics = [#tpu.dimension_semantics<parallel>], iteration_bounds = array<i64: 1>, scalar_prefetch = 0 : i64, scratch_operands = 0 : i64, tpu.core_type = #tpu.core_type<tc>, window_params = [{transform_indices = @transform_0, window_bounds = array<i64: 1, 64, 8>}, {pipeline_mode = #tpu.pipeline_mode<synchronous>, transform_indices = @transform_1, window_bounds = array<i64: 8, 96>}, {pipeline_mode = #tpu.pipeline_mode<synchronous>, transform_indices = @transform_2, window_bounds = array<i64: 32, 96>}, {pipeline_mode = #tpu.pipeline_mode<synchronous>, transform_indices = @transform_3, window_bounds = array<i64: 1, 96>}, {pipeline_mode = #tpu.pipeline_mode<synchronous>, transform_indices = @transform_4, window_bounds = array<i64: 1, 32>}, {pipeline_mode = #tpu.pipeline_mode<synchronous>, transform_indices = @transform_5, window_bounds = array<i64: 32, 24>}, {pipeline_mode = #tpu.pipeline_mode<synchronous>, transform_indices = @transform_6, window_bounds = array<i64: 8, 24>}, {pipeline_mode = #tpu.pipeline_mode<synchronous>, transform_indices = @transform_7, window_bounds = array<i64: 1, 24>}, {pipeline_mode = #tpu.pipeline_mode<synchronous>, transform_indices = @transform_8, window_bounds = array<i64: 1, 8>}, {transform_indices = @transform_9, window_bounds = array<i64: 1, 8, 256>}, {transform_indices = @transform_10, window_bounds = array<i64: 1, 8, 64>}]} {
    %c0 = arith.constant 0 : index
    %c0_0 = arith.constant 0 : index
    %0 = vector.load %arg2[%c0, %c0_0] : memref<8x96xf32, #tpu.memory_space<vmem>>, vector<8x96xf32>
    %c0_1 = arith.constant 0 : index
    %c0_2 = arith.constant 0 : index
    %1 = vector.load %arg3[%c0_1, %c0_2] : memref<32x96xf32, #tpu.memory_space<vmem>>, vector<32x96xf32>
    %c0_3 = arith.constant 0 : index
    %c0_4 = arith.constant 0 : index
    %2 = vector.load %arg6[%c0_3, %c0_4] : memref<32x24xf32, #tpu.memory_space<vmem>>, vector<32x24xf32>
    %c0_5 = arith.constant 0 : index
    %c0_6 = arith.constant 0 : index
    %3 = vector.load %arg7[%c0_5, %c0_6] : memref<8x24xf32, #tpu.memory_space<vmem>>, vector<8x24xf32>
    %c0_7 = arith.constant 0 : index
    %c0_8 = arith.constant 0 : index
    %4 = vector.load %arg8[%c0_7, %c0_8] : memref<1x24xf32, #tpu.memory_space<vmem>>, vector<1x24xf32>
    %5 = vector.shape_cast %4 : vector<1x24xf32> to vector<1x24xf32>
    %6 = vector.broadcast %5 : vector<1x24xf32> to vector<8x24xf32>
    %c0_9 = arith.constant 0 : index
    %c0_10 = arith.constant 0 : index
    %7 = vector.load %arg5[%c0_9, %c0_10] : memref<1x32xf32, #tpu.memory_space<vmem>>, vector<1x32xf32>
    %8 = vector.shape_cast %7 : vector<1x32xf32> to vector<1x32xf32>
    %9 = vector.broadcast %8 : vector<1x32xf32> to vector<8x32xf32>
    %c0_11 = arith.constant 0 : index
    %c0_12 = arith.constant 0 : index
    %10 = vector.load %arg9[%c0_11, %c0_12] : memref<1x8xf32, #tpu.memory_space<vmem>>, vector<1x8xf32>
    %11 = vector.shape_cast %10 : vector<1x8xf32> to vector<1x8xf32>
    %12 = vector.broadcast %11 : vector<1x8xf32> to vector<8x8xf32>
    %c0_13 = arith.constant 0 : index
    %c0_14 = arith.constant 0 : index
    %c0_15 = arith.constant 0 : index
    %13 = vector.load %arg1[%c0_13, %c0_14, %c0_15] : memref<1x64x8xf32, #tpu.memory_space<vmem>>, vector<1x64x8xf32>
    %14 = vector.shape_cast %13 : vector<1x64x8xf32> to vector<64x8xf32>
    %cst = arith.constant dense<0.000000e+00> : vector<64x96xf32>
    %15 = tpu.matmul %14, %0, %cst {dimension_numbers = #tpu.dot_dimension_numbers<[1], [0], [0], [1], [0, 0, 1, 1], [], []>} : vector<64x8xf32>, vector<8x96xf32>, vector<64x96xf32> -> vector<64x96xf32>
    %c0_16 = arith.constant 0 : index
    %c0_17 = arith.constant 0 : index
    %16 = vector.load %arg4[%c0_16, %c0_17] : memref<1x96xf32, #tpu.memory_space<vmem>>, vector<1x96xf32>
    %17 = vector.broadcast %16 : vector<1x96xf32> to vector<64x96xf32>
    %18 = arith.addf %15, %17 : vector<64x96xf32>
    %19 = vector.extract_strided_slice %18 {offsets = [0, 0], sizes = [8, 96], strides = [1, 1]} : vector<64x96xf32> to vector<8x96xf32>
    %20 = vector.extract_strided_slice %19 {offsets = [0, 0], sizes = [8, 64], strides = [1, 1]} : vector<8x96xf32> to vector<8x64xf32>
    %21 = arith.negf %20 : vector<8x64xf32>
    %22 = math.exp %21 : vector<8x64xf32>
    %cst_18 = arith.constant 1.000000e+00 : f32
    %23 = vector.broadcast %cst_18 : f32 to vector<8x64xf32>
    %24 = arith.addf %23, %22 : vector<8x64xf32>
    %25 = arith.divf %23, %24 : vector<8x64xf32>
    %26 = vector.extract_strided_slice %25 {offsets = [0, 0], sizes = [8, 32], strides = [1, 1]} : vector<8x64xf32> to vector<8x32xf32>
    %27 = vector.extract_strided_slice %25 {offsets = [0, 32], sizes = [8, 32], strides = [1, 1]} : vector<8x64xf32> to vector<8x32xf32>
    %28 = vector.extract_strided_slice %19 {offsets = [0, 64], sizes = [8, 32], strides = [1, 1]} : vector<8x96xf32> to vector<8x32xf32>
    %29 = arith.mulf %26, %9 : vector<8x32xf32>
    %30 = arith.addf %28, %29 : vector<8x32xf32>
    %31 = math.tanh %30 : vector<8x32xf32>
    %cst_19 = arith.constant 1.000000e+00 : f32
    %32 = vector.broadcast %cst_19 : f32 to vector<8x32xf32>
    %33 = arith.subf %32, %27 : vector<8x32xf32>
    %34 = arith.mulf %33, %31 : vector<8x32xf32>
    %cst_20 = arith.constant dense<0.000000e+00> : vector<8x24xf32>
    %35 = tpu.matmul %34, %2, %cst_20 {dimension_numbers = #tpu.dot_dimension_numbers<[1], [0], [0], [1], [0, 0, 1, 1], [], []>} : vector<8x32xf32>, vector<32x24xf32>, vector<8x24xf32> -> vector<8x24xf32>
    %36 = arith.addf %35, %6 : vector<8x24xf32>
    %37 = vector.extract_strided_slice %36 {offsets = [0, 0], sizes = [8, 16], strides = [1, 1]} : vector<8x24xf32> to vector<8x16xf32>
    %38 = arith.negf %37 : vector<8x16xf32>
    %39 = math.exp %38 : vector<8x16xf32>
    %cst_21 = arith.constant 1.000000e+00 : f32
    %40 = vector.broadcast %cst_21 : f32 to vector<8x16xf32>
    %41 = arith.addf %40, %39 : vector<8x16xf32>
    %42 = arith.divf %40, %41 : vector<8x16xf32>
    %43 = vector.extract_strided_slice %42 {offsets = [0, 0], sizes = [8, 8], strides = [1, 1]} : vector<8x16xf32> to vector<8x8xf32>
    %44 = vector.extract_strided_slice %42 {offsets = [0, 8], sizes = [8, 8], strides = [1, 1]} : vector<8x16xf32> to vector<8x8xf32>
    %45 = vector.extract_strided_slice %36 {offsets = [0, 16], sizes = [8, 8], strides = [1, 1]} : vector<8x24xf32> to vector<8x8xf32>
    %46 = arith.mulf %43, %12 : vector<8x8xf32>
    %47 = arith.addf %45, %46 : vector<8x8xf32>
    %48 = math.tanh %47 : vector<8x8xf32>
    %cst_22 = arith.constant 1.000000e+00 : f32
    %49 = vector.broadcast %cst_22 : f32 to vector<8x8xf32>
    %50 = arith.subf %49, %44 : vector<8x8xf32>
    %51 = arith.mulf %50, %48 : vector<8x8xf32>
    %cst_23 = arith.constant dense<0.000000e+00> : vector<8x96xf32>
    %52 = tpu.matmul %34, %1, %cst_23 {dimension_numbers = #tpu.dot_dimension_numbers<[1], [0], [0], [1], [0, 0, 1, 1], [], []>} : vector<8x32xf32>, vector<32x96xf32>, vector<8x96xf32> -> vector<8x96xf32>
    %53 = vector.extract_strided_slice %18 {offsets = [8, 0], sizes = [8, 96], strides = [1, 1]} : vector<64x96xf32> to vector<8x96xf32>
    %54 = vector.extract_strided_slice %53 {offsets = [0, 0], sizes = [8, 64], strides = [1, 1]} : vector<8x96xf32> to vector<8x64xf32>
    %55 = vector.extract_strided_slice %52 {offsets = [0, 0], sizes = [8, 64], strides = [1, 1]} : vector<8x96xf32> to vector<8x64xf32>
    %56 = arith.addf %54, %55 : vector<8x64xf32>
    %57 = arith.negf %56 : vector<8x64xf32>
    %58 = math.exp %57 : vector<8x64xf32>
    %cst_24 = arith.constant 1.000000e+00 : f32
    %59 = vector.broadcast %cst_24 : f32 to vector<8x64xf32>
    %60 = arith.addf %59, %58 : vector<8x64xf32>
    %61 = arith.divf %59, %60 : vector<8x64xf32>
    %62 = vector.extract_strided_slice %61 {offsets = [0, 0], sizes = [8, 32], strides = [1, 1]} : vector<8x64xf32> to vector<8x32xf32>
    %63 = vector.extract_strided_slice %61 {offsets = [0, 32], sizes = [8, 32], strides = [1, 1]} : vector<8x64xf32> to vector<8x32xf32>
    %64 = vector.extract_strided_slice %53 {offsets = [0, 64], sizes = [8, 32], strides = [1, 1]} : vector<8x96xf32> to vector<8x32xf32>
    %65 = vector.extract_strided_slice %52 {offsets = [0, 64], sizes = [8, 32], strides = [1, 1]} : vector<8x96xf32> to vector<8x32xf32>
    %66 = arith.addf %65, %9 : vector<8x32xf32>
    %67 = arith.mulf %62, %66 : vector<8x32xf32>
    %68 = arith.addf %64, %67 : vector<8x32xf32>
    %69 = math.tanh %68 : vector<8x32xf32>
    %cst_25 = arith.constant 1.000000e+00 : f32
    %70 = vector.broadcast %cst_25 : f32 to vector<8x32xf32>
    %71 = arith.subf %70, %63 : vector<8x32xf32>
    %72 = arith.mulf %71, %69 : vector<8x32xf32>
    %73 = arith.mulf %63, %34 : vector<8x32xf32>
    %74 = arith.addf %72, %73 : vector<8x32xf32>
    %cst_26 = arith.constant dense<0.000000e+00> : vector<8x24xf32>
    %75 = tpu.matmul %51, %3, %cst_26 {dimension_numbers = #tpu.dot_dimension_numbers<[1], [0], [0], [1], [0, 0, 1, 1], [], []>} : vector<8x8xf32>, vector<8x24xf32>, vector<8x24xf32> -> vector<8x24xf32>
    %cst_27 = arith.constant dense<0.000000e+00> : vector<8x24xf32>
    %76 = tpu.matmul %74, %2, %cst_27 {dimension_numbers = #tpu.dot_dimension_numbers<[1], [0], [0], [1], [0, 0, 1, 1], [], []>} : vector<8x32xf32>, vector<32x24xf32>, vector<8x24xf32> -> vector<8x24xf32>
    %77 = arith.addf %76, %6 : vector<8x24xf32>
    %78 = vector.extract_strided_slice %77 {offsets = [0, 0], sizes = [8, 16], strides = [1, 1]} : vector<8x24xf32> to vector<8x16xf32>
    %79 = vector.extract_strided_slice %75 {offsets = [0, 0], sizes = [8, 16], strides = [1, 1]} : vector<8x24xf32> to vector<8x16xf32>
    %80 = arith.addf %78, %79 : vector<8x16xf32>
    %81 = arith.negf %80 : vector<8x16xf32>
    %82 = math.exp %81 : vector<8x16xf32>
    %cst_28 = arith.constant 1.000000e+00 : f32
    %83 = vector.broadcast %cst_28 : f32 to vector<8x16xf32>
    %84 = arith.addf %83, %82 : vector<8x16xf32>
    %85 = arith.divf %83, %84 : vector<8x16xf32>
    %86 = vector.extract_strided_slice %85 {offsets = [0, 0], sizes = [8, 8], strides = [1, 1]} : vector<8x16xf32> to vector<8x8xf32>
    %87 = vector.extract_strided_slice %85 {offsets = [0, 8], sizes = [8, 8], strides = [1, 1]} : vector<8x16xf32> to vector<8x8xf32>
    %88 = vector.extract_strided_slice %77 {offsets = [0, 16], sizes = [8, 8], strides = [1, 1]} : vector<8x24xf32> to vector<8x8xf32>
    %89 = vector.extract_strided_slice %75 {offsets = [0, 16], sizes = [8, 8], strides = [1, 1]} : vector<8x24xf32> to vector<8x8xf32>
    %90 = arith.addf %89, %12 : vector<8x8xf32>
    %91 = arith.mulf %86, %90 : vector<8x8xf32>
    %92 = arith.addf %88, %91 : vector<8x8xf32>
    %93 = math.tanh %92 : vector<8x8xf32>
    %cst_29 = arith.constant 1.000000e+00 : f32
    %94 = vector.broadcast %cst_29 : f32 to vector<8x8xf32>
    %95 = arith.subf %94, %87 : vector<8x8xf32>
    %96 = arith.mulf %95, %93 : vector<8x8xf32>
    %97 = arith.mulf %87, %51 : vector<8x8xf32>
    %98 = arith.addf %96, %97 : vector<8x8xf32>
    %cst_30 = arith.constant dense<0.000000e+00> : vector<8x96xf32>
    %99 = tpu.matmul %74, %1, %cst_30 {dimension_numbers = #tpu.dot_dimension_numbers<[1], [0], [0], [1], [0, 0, 1, 1], [], []>} : vector<8x32xf32>, vector<32x96xf32>, vector<8x96xf32> -> vector<8x96xf32>
    %100 = vector.extract_strided_slice %18 {offsets = [16, 0], sizes = [8, 96], strides = [1, 1]} : vector<64x96xf32> to vector<8x96xf32>
    %101 = vector.extract_strided_slice %100 {offsets = [0, 0], sizes = [8, 64], strides = [1, 1]} : vector<8x96xf32> to vector<8x64xf32>
    %102 = vector.extract_strided_slice %99 {offsets = [0, 0], sizes = [8, 64], strides = [1, 1]} : vector<8x96xf32> to vector<8x64xf32>
    %103 = arith.addf %101, %102 : vector<8x64xf32>
    %104 = arith.negf %103 : vector<8x64xf32>
    %105 = math.exp %104 : vector<8x64xf32>
    %cst_31 = arith.constant 1.000000e+00 : f32
    %106 = vector.broadcast %cst_31 : f32 to vector<8x64xf32>
    %107 = arith.addf %106, %105 : vector<8x64xf32>
    %108 = arith.divf %106, %107 : vector<8x64xf32>
    %109 = vector.extract_strided_slice %108 {offsets = [0, 0], sizes = [8, 32], strides = [1, 1]} : vector<8x64xf32> to vector<8x32xf32>
    %110 = vector.extract_strided_slice %108 {offsets = [0, 32], sizes = [8, 32], strides = [1, 1]} : vector<8x64xf32> to vector<8x32xf32>
    %111 = vector.extract_strided_slice %100 {offsets = [0, 64], sizes = [8, 32], strides = [1, 1]} : vector<8x96xf32> to vector<8x32xf32>
    %112 = vector.extract_strided_slice %99 {offsets = [0, 64], sizes = [8, 32], strides = [1, 1]} : vector<8x96xf32> to vector<8x32xf32>
    %113 = arith.addf %112, %9 : vector<8x32xf32>
    %114 = arith.mulf %109, %113 : vector<8x32xf32>
    %115 = arith.addf %111, %114 : vector<8x32xf32>
    %116 = math.tanh %115 : vector<8x32xf32>
    %cst_32 = arith.constant 1.000000e+00 : f32
    %117 = vector.broadcast %cst_32 : f32 to vector<8x32xf32>
    %118 = arith.subf %117, %110 : vector<8x32xf32>
    %119 = arith.mulf %118, %116 : vector<8x32xf32>
    %120 = arith.mulf %110, %74 : vector<8x32xf32>
    %121 = arith.addf %119, %120 : vector<8x32xf32>
    %cst_33 = arith.constant dense<0.000000e+00> : vector<8x24xf32>
    %122 = tpu.matmul %98, %3, %cst_33 {dimension_numbers = #tpu.dot_dimension_numbers<[1], [0], [0], [1], [0, 0, 1, 1], [], []>} : vector<8x8xf32>, vector<8x24xf32>, vector<8x24xf32> -> vector<8x24xf32>
    %cst_34 = arith.constant dense<0.000000e+00> : vector<8x24xf32>
    %123 = tpu.matmul %121, %2, %cst_34 {dimension_numbers = #tpu.dot_dimension_numbers<[1], [0], [0], [1], [0, 0, 1, 1], [], []>} : vector<8x32xf32>, vector<32x24xf32>, vector<8x24xf32> -> vector<8x24xf32>
    %124 = arith.addf %123, %6 : vector<8x24xf32>
    %125 = vector.extract_strided_slice %124 {offsets = [0, 0], sizes = [8, 16], strides = [1, 1]} : vector<8x24xf32> to vector<8x16xf32>
    %126 = vector.extract_strided_slice %122 {offsets = [0, 0], sizes = [8, 16], strides = [1, 1]} : vector<8x24xf32> to vector<8x16xf32>
    %127 = arith.addf %125, %126 : vector<8x16xf32>
    %128 = arith.negf %127 : vector<8x16xf32>
    %129 = math.exp %128 : vector<8x16xf32>
    %cst_35 = arith.constant 1.000000e+00 : f32
    %130 = vector.broadcast %cst_35 : f32 to vector<8x16xf32>
    %131 = arith.addf %130, %129 : vector<8x16xf32>
    %132 = arith.divf %130, %131 : vector<8x16xf32>
    %133 = vector.extract_strided_slice %132 {offsets = [0, 0], sizes = [8, 8], strides = [1, 1]} : vector<8x16xf32> to vector<8x8xf32>
    %134 = vector.extract_strided_slice %132 {offsets = [0, 8], sizes = [8, 8], strides = [1, 1]} : vector<8x16xf32> to vector<8x8xf32>
    %135 = vector.extract_strided_slice %124 {offsets = [0, 16], sizes = [8, 8], strides = [1, 1]} : vector<8x24xf32> to vector<8x8xf32>
    %136 = vector.extract_strided_slice %122 {offsets = [0, 16], sizes = [8, 8], strides = [1, 1]} : vector<8x24xf32> to vector<8x8xf32>
    %137 = arith.addf %136, %12 : vector<8x8xf32>
    %138 = arith.mulf %133, %137 : vector<8x8xf32>
    %139 = arith.addf %135, %138 : vector<8x8xf32>
    %140 = math.tanh %139 : vector<8x8xf32>
    %cst_36 = arith.constant 1.000000e+00 : f32
    %141 = vector.broadcast %cst_36 : f32 to vector<8x8xf32>
    %142 = arith.subf %141, %134 : vector<8x8xf32>
    %143 = arith.mulf %142, %140 : vector<8x8xf32>
    %144 = arith.mulf %134, %98 : vector<8x8xf32>
    %145 = arith.addf %143, %144 : vector<8x8xf32>
    %cst_37 = arith.constant dense<0.000000e+00> : vector<8x96xf32>
    %146 = tpu.matmul %121, %1, %cst_37 {dimension_numbers = #tpu.dot_dimension_numbers<[1], [0], [0], [1], [0, 0, 1, 1], [], []>} : vector<8x32xf32>, vector<32x96xf32>, vector<8x96xf32> -> vector<8x96xf32>
    %147 = vector.extract_strided_slice %18 {offsets = [24, 0], sizes = [8, 96], strides = [1, 1]} : vector<64x96xf32> to vector<8x96xf32>
    %148 = vector.extract_strided_slice %147 {offsets = [0, 0], sizes = [8, 64], strides = [1, 1]} : vector<8x96xf32> to vector<8x64xf32>
    %149 = vector.extract_strided_slice %146 {offsets = [0, 0], sizes = [8, 64], strides = [1, 1]} : vector<8x96xf32> to vector<8x64xf32>
    %150 = arith.addf %148, %149 : vector<8x64xf32>
    %151 = arith.negf %150 : vector<8x64xf32>
    %152 = math.exp %151 : vector<8x64xf32>
    %cst_38 = arith.constant 1.000000e+00 : f32
    %153 = vector.broadcast %cst_38 : f32 to vector<8x64xf32>
    %154 = arith.addf %153, %152 : vector<8x64xf32>
    %155 = arith.divf %153, %154 : vector<8x64xf32>
    %156 = vector.extract_strided_slice %155 {offsets = [0, 0], sizes = [8, 32], strides = [1, 1]} : vector<8x64xf32> to vector<8x32xf32>
    %157 = vector.extract_strided_slice %155 {offsets = [0, 32], sizes = [8, 32], strides = [1, 1]} : vector<8x64xf32> to vector<8x32xf32>
    %158 = vector.extract_strided_slice %147 {offsets = [0, 64], sizes = [8, 32], strides = [1, 1]} : vector<8x96xf32> to vector<8x32xf32>
    %159 = vector.extract_strided_slice %146 {offsets = [0, 64], sizes = [8, 32], strides = [1, 1]} : vector<8x96xf32> to vector<8x32xf32>
    %160 = arith.addf %159, %9 : vector<8x32xf32>
    %161 = arith.mulf %156, %160 : vector<8x32xf32>
    %162 = arith.addf %158, %161 : vector<8x32xf32>
    %163 = math.tanh %162 : vector<8x32xf32>
    %cst_39 = arith.constant 1.000000e+00 : f32
    %164 = vector.broadcast %cst_39 : f32 to vector<8x32xf32>
    %165 = arith.subf %164, %157 : vector<8x32xf32>
    %166 = arith.mulf %165, %163 : vector<8x32xf32>
    %167 = arith.mulf %157, %121 : vector<8x32xf32>
    %168 = arith.addf %166, %167 : vector<8x32xf32>
    %cst_40 = arith.constant dense<0.000000e+00> : vector<8x24xf32>
    %169 = tpu.matmul %145, %3, %cst_40 {dimension_numbers = #tpu.dot_dimension_numbers<[1], [0], [0], [1], [0, 0, 1, 1], [], []>} : vector<8x8xf32>, vector<8x24xf32>, vector<8x24xf32> -> vector<8x24xf32>
    %cst_41 = arith.constant dense<0.000000e+00> : vector<8x24xf32>
    %170 = tpu.matmul %168, %2, %cst_41 {dimension_numbers = #tpu.dot_dimension_numbers<[1], [0], [0], [1], [0, 0, 1, 1], [], []>} : vector<8x32xf32>, vector<32x24xf32>, vector<8x24xf32> -> vector<8x24xf32>
    %171 = arith.addf %170, %6 : vector<8x24xf32>
    %172 = vector.extract_strided_slice %171 {offsets = [0, 0], sizes = [8, 16], strides = [1, 1]} : vector<8x24xf32> to vector<8x16xf32>
    %173 = vector.extract_strided_slice %169 {offsets = [0, 0], sizes = [8, 16], strides = [1, 1]} : vector<8x24xf32> to vector<8x16xf32>
    %174 = arith.addf %172, %173 : vector<8x16xf32>
    %175 = arith.negf %174 : vector<8x16xf32>
    %176 = math.exp %175 : vector<8x16xf32>
    %cst_42 = arith.constant 1.000000e+00 : f32
    %177 = vector.broadcast %cst_42 : f32 to vector<8x16xf32>
    %178 = arith.addf %177, %176 : vector<8x16xf32>
    %179 = arith.divf %177, %178 : vector<8x16xf32>
    %180 = vector.extract_strided_slice %179 {offsets = [0, 0], sizes = [8, 8], strides = [1, 1]} : vector<8x16xf32> to vector<8x8xf32>
    %181 = vector.extract_strided_slice %179 {offsets = [0, 8], sizes = [8, 8], strides = [1, 1]} : vector<8x16xf32> to vector<8x8xf32>
    %182 = vector.extract_strided_slice %171 {offsets = [0, 16], sizes = [8, 8], strides = [1, 1]} : vector<8x24xf32> to vector<8x8xf32>
    %183 = vector.extract_strided_slice %169 {offsets = [0, 16], sizes = [8, 8], strides = [1, 1]} : vector<8x24xf32> to vector<8x8xf32>
    %184 = arith.addf %183, %12 : vector<8x8xf32>
    %185 = arith.mulf %180, %184 : vector<8x8xf32>
    %186 = arith.addf %182, %185 : vector<8x8xf32>
    %187 = math.tanh %186 : vector<8x8xf32>
    %cst_43 = arith.constant 1.000000e+00 : f32
    %188 = vector.broadcast %cst_43 : f32 to vector<8x8xf32>
    %189 = arith.subf %188, %181 : vector<8x8xf32>
    %190 = arith.mulf %189, %187 : vector<8x8xf32>
    %191 = arith.mulf %181, %145 : vector<8x8xf32>
    %192 = arith.addf %190, %191 : vector<8x8xf32>
    %cst_44 = arith.constant dense<0.000000e+00> : vector<8x96xf32>
    %193 = tpu.matmul %168, %1, %cst_44 {dimension_numbers = #tpu.dot_dimension_numbers<[1], [0], [0], [1], [0, 0, 1, 1], [], []>} : vector<8x32xf32>, vector<32x96xf32>, vector<8x96xf32> -> vector<8x96xf32>
    %194 = vector.extract_strided_slice %18 {offsets = [32, 0], sizes = [8, 96], strides = [1, 1]} : vector<64x96xf32> to vector<8x96xf32>
    %195 = vector.extract_strided_slice %194 {offsets = [0, 0], sizes = [8, 64], strides = [1, 1]} : vector<8x96xf32> to vector<8x64xf32>
    %196 = vector.extract_strided_slice %193 {offsets = [0, 0], sizes = [8, 64], strides = [1, 1]} : vector<8x96xf32> to vector<8x64xf32>
    %197 = arith.addf %195, %196 : vector<8x64xf32>
    %198 = arith.negf %197 : vector<8x64xf32>
    %199 = math.exp %198 : vector<8x64xf32>
    %cst_45 = arith.constant 1.000000e+00 : f32
    %200 = vector.broadcast %cst_45 : f32 to vector<8x64xf32>
    %201 = arith.addf %200, %199 : vector<8x64xf32>
    %202 = arith.divf %200, %201 : vector<8x64xf32>
    %203 = vector.extract_strided_slice %202 {offsets = [0, 0], sizes = [8, 32], strides = [1, 1]} : vector<8x64xf32> to vector<8x32xf32>
    %204 = vector.extract_strided_slice %202 {offsets = [0, 32], sizes = [8, 32], strides = [1, 1]} : vector<8x64xf32> to vector<8x32xf32>
    %205 = vector.extract_strided_slice %194 {offsets = [0, 64], sizes = [8, 32], strides = [1, 1]} : vector<8x96xf32> to vector<8x32xf32>
    %206 = vector.extract_strided_slice %193 {offsets = [0, 64], sizes = [8, 32], strides = [1, 1]} : vector<8x96xf32> to vector<8x32xf32>
    %207 = arith.addf %206, %9 : vector<8x32xf32>
    %208 = arith.mulf %203, %207 : vector<8x32xf32>
    %209 = arith.addf %205, %208 : vector<8x32xf32>
    %210 = math.tanh %209 : vector<8x32xf32>
    %cst_46 = arith.constant 1.000000e+00 : f32
    %211 = vector.broadcast %cst_46 : f32 to vector<8x32xf32>
    %212 = arith.subf %211, %204 : vector<8x32xf32>
    %213 = arith.mulf %212, %210 : vector<8x32xf32>
    %214 = arith.mulf %204, %168 : vector<8x32xf32>
    %215 = arith.addf %213, %214 : vector<8x32xf32>
    %cst_47 = arith.constant dense<0.000000e+00> : vector<8x24xf32>
    %216 = tpu.matmul %192, %3, %cst_47 {dimension_numbers = #tpu.dot_dimension_numbers<[1], [0], [0], [1], [0, 0, 1, 1], [], []>} : vector<8x8xf32>, vector<8x24xf32>, vector<8x24xf32> -> vector<8x24xf32>
    %cst_48 = arith.constant dense<0.000000e+00> : vector<8x24xf32>
    %217 = tpu.matmul %215, %2, %cst_48 {dimension_numbers = #tpu.dot_dimension_numbers<[1], [0], [0], [1], [0, 0, 1, 1], [], []>} : vector<8x32xf32>, vector<32x24xf32>, vector<8x24xf32> -> vector<8x24xf32>
    %218 = arith.addf %217, %6 : vector<8x24xf32>
    %219 = vector.extract_strided_slice %218 {offsets = [0, 0], sizes = [8, 16], strides = [1, 1]} : vector<8x24xf32> to vector<8x16xf32>
    %220 = vector.extract_strided_slice %216 {offsets = [0, 0], sizes = [8, 16], strides = [1, 1]} : vector<8x24xf32> to vector<8x16xf32>
    %221 = arith.addf %219, %220 : vector<8x16xf32>
    %222 = arith.negf %221 : vector<8x16xf32>
    %223 = math.exp %222 : vector<8x16xf32>
    %cst_49 = arith.constant 1.000000e+00 : f32
    %224 = vector.broadcast %cst_49 : f32 to vector<8x16xf32>
    %225 = arith.addf %224, %223 : vector<8x16xf32>
    %226 = arith.divf %224, %225 : vector<8x16xf32>
    %227 = vector.extract_strided_slice %226 {offsets = [0, 0], sizes = [8, 8], strides = [1, 1]} : vector<8x16xf32> to vector<8x8xf32>
    %228 = vector.extract_strided_slice %226 {offsets = [0, 8], sizes = [8, 8], strides = [1, 1]} : vector<8x16xf32> to vector<8x8xf32>
    %229 = vector.extract_strided_slice %218 {offsets = [0, 16], sizes = [8, 8], strides = [1, 1]} : vector<8x24xf32> to vector<8x8xf32>
    %230 = vector.extract_strided_slice %216 {offsets = [0, 16], sizes = [8, 8], strides = [1, 1]} : vector<8x24xf32> to vector<8x8xf32>
    %231 = arith.addf %230, %12 : vector<8x8xf32>
    %232 = arith.mulf %227, %231 : vector<8x8xf32>
    %233 = arith.addf %229, %232 : vector<8x8xf32>
    %234 = math.tanh %233 : vector<8x8xf32>
    %cst_50 = arith.constant 1.000000e+00 : f32
    %235 = vector.broadcast %cst_50 : f32 to vector<8x8xf32>
    %236 = arith.subf %235, %228 : vector<8x8xf32>
    %237 = arith.mulf %236, %234 : vector<8x8xf32>
    %238 = arith.mulf %228, %192 : vector<8x8xf32>
    %239 = arith.addf %237, %238 : vector<8x8xf32>
    %cst_51 = arith.constant dense<0.000000e+00> : vector<8x96xf32>
    %240 = tpu.matmul %215, %1, %cst_51 {dimension_numbers = #tpu.dot_dimension_numbers<[1], [0], [0], [1], [0, 0, 1, 1], [], []>} : vector<8x32xf32>, vector<32x96xf32>, vector<8x96xf32> -> vector<8x96xf32>
    %241 = vector.extract_strided_slice %18 {offsets = [40, 0], sizes = [8, 96], strides = [1, 1]} : vector<64x96xf32> to vector<8x96xf32>
    %242 = vector.extract_strided_slice %241 {offsets = [0, 0], sizes = [8, 64], strides = [1, 1]} : vector<8x96xf32> to vector<8x64xf32>
    %243 = vector.extract_strided_slice %240 {offsets = [0, 0], sizes = [8, 64], strides = [1, 1]} : vector<8x96xf32> to vector<8x64xf32>
    %244 = arith.addf %242, %243 : vector<8x64xf32>
    %245 = arith.negf %244 : vector<8x64xf32>
    %246 = math.exp %245 : vector<8x64xf32>
    %cst_52 = arith.constant 1.000000e+00 : f32
    %247 = vector.broadcast %cst_52 : f32 to vector<8x64xf32>
    %248 = arith.addf %247, %246 : vector<8x64xf32>
    %249 = arith.divf %247, %248 : vector<8x64xf32>
    %250 = vector.extract_strided_slice %249 {offsets = [0, 0], sizes = [8, 32], strides = [1, 1]} : vector<8x64xf32> to vector<8x32xf32>
    %251 = vector.extract_strided_slice %249 {offsets = [0, 32], sizes = [8, 32], strides = [1, 1]} : vector<8x64xf32> to vector<8x32xf32>
    %252 = vector.extract_strided_slice %241 {offsets = [0, 64], sizes = [8, 32], strides = [1, 1]} : vector<8x96xf32> to vector<8x32xf32>
    %253 = vector.extract_strided_slice %240 {offsets = [0, 64], sizes = [8, 32], strides = [1, 1]} : vector<8x96xf32> to vector<8x32xf32>
    %254 = arith.addf %253, %9 : vector<8x32xf32>
    %255 = arith.mulf %250, %254 : vector<8x32xf32>
    %256 = arith.addf %252, %255 : vector<8x32xf32>
    %257 = math.tanh %256 : vector<8x32xf32>
    %cst_53 = arith.constant 1.000000e+00 : f32
    %258 = vector.broadcast %cst_53 : f32 to vector<8x32xf32>
    %259 = arith.subf %258, %251 : vector<8x32xf32>
    %260 = arith.mulf %259, %257 : vector<8x32xf32>
    %261 = arith.mulf %251, %215 : vector<8x32xf32>
    %262 = arith.addf %260, %261 : vector<8x32xf32>
    %cst_54 = arith.constant dense<0.000000e+00> : vector<8x24xf32>
    %263 = tpu.matmul %239, %3, %cst_54 {dimension_numbers = #tpu.dot_dimension_numbers<[1], [0], [0], [1], [0, 0, 1, 1], [], []>} : vector<8x8xf32>, vector<8x24xf32>, vector<8x24xf32> -> vector<8x24xf32>
    %cst_55 = arith.constant dense<0.000000e+00> : vector<8x24xf32>
    %264 = tpu.matmul %262, %2, %cst_55 {dimension_numbers = #tpu.dot_dimension_numbers<[1], [0], [0], [1], [0, 0, 1, 1], [], []>} : vector<8x32xf32>, vector<32x24xf32>, vector<8x24xf32> -> vector<8x24xf32>
    %265 = arith.addf %264, %6 : vector<8x24xf32>
    %266 = vector.extract_strided_slice %265 {offsets = [0, 0], sizes = [8, 16], strides = [1, 1]} : vector<8x24xf32> to vector<8x16xf32>
    %267 = vector.extract_strided_slice %263 {offsets = [0, 0], sizes = [8, 16], strides = [1, 1]} : vector<8x24xf32> to vector<8x16xf32>
    %268 = arith.addf %266, %267 : vector<8x16xf32>
    %269 = arith.negf %268 : vector<8x16xf32>
    %270 = math.exp %269 : vector<8x16xf32>
    %cst_56 = arith.constant 1.000000e+00 : f32
    %271 = vector.broadcast %cst_56 : f32 to vector<8x16xf32>
    %272 = arith.addf %271, %270 : vector<8x16xf32>
    %273 = arith.divf %271, %272 : vector<8x16xf32>
    %274 = vector.extract_strided_slice %273 {offsets = [0, 0], sizes = [8, 8], strides = [1, 1]} : vector<8x16xf32> to vector<8x8xf32>
    %275 = vector.extract_strided_slice %273 {offsets = [0, 8], sizes = [8, 8], strides = [1, 1]} : vector<8x16xf32> to vector<8x8xf32>
    %276 = vector.extract_strided_slice %265 {offsets = [0, 16], sizes = [8, 8], strides = [1, 1]} : vector<8x24xf32> to vector<8x8xf32>
    %277 = vector.extract_strided_slice %263 {offsets = [0, 16], sizes = [8, 8], strides = [1, 1]} : vector<8x24xf32> to vector<8x8xf32>
    %278 = arith.addf %277, %12 : vector<8x8xf32>
    %279 = arith.mulf %274, %278 : vector<8x8xf32>
    %280 = arith.addf %276, %279 : vector<8x8xf32>
    %281 = math.tanh %280 : vector<8x8xf32>
    %cst_57 = arith.constant 1.000000e+00 : f32
    %282 = vector.broadcast %cst_57 : f32 to vector<8x8xf32>
    %283 = arith.subf %282, %275 : vector<8x8xf32>
    %284 = arith.mulf %283, %281 : vector<8x8xf32>
    %285 = arith.mulf %275, %239 : vector<8x8xf32>
    %286 = arith.addf %284, %285 : vector<8x8xf32>
    %cst_58 = arith.constant dense<0.000000e+00> : vector<8x96xf32>
    %287 = tpu.matmul %262, %1, %cst_58 {dimension_numbers = #tpu.dot_dimension_numbers<[1], [0], [0], [1], [0, 0, 1, 1], [], []>} : vector<8x32xf32>, vector<32x96xf32>, vector<8x96xf32> -> vector<8x96xf32>
    %288 = vector.extract_strided_slice %18 {offsets = [48, 0], sizes = [8, 96], strides = [1, 1]} : vector<64x96xf32> to vector<8x96xf32>
    %289 = vector.extract_strided_slice %288 {offsets = [0, 0], sizes = [8, 64], strides = [1, 1]} : vector<8x96xf32> to vector<8x64xf32>
    %290 = vector.extract_strided_slice %287 {offsets = [0, 0], sizes = [8, 64], strides = [1, 1]} : vector<8x96xf32> to vector<8x64xf32>
    %291 = arith.addf %289, %290 : vector<8x64xf32>
    %292 = arith.negf %291 : vector<8x64xf32>
    %293 = math.exp %292 : vector<8x64xf32>
    %cst_59 = arith.constant 1.000000e+00 : f32
    %294 = vector.broadcast %cst_59 : f32 to vector<8x64xf32>
    %295 = arith.addf %294, %293 : vector<8x64xf32>
    %296 = arith.divf %294, %295 : vector<8x64xf32>
    %297 = vector.extract_strided_slice %296 {offsets = [0, 0], sizes = [8, 32], strides = [1, 1]} : vector<8x64xf32> to vector<8x32xf32>
    %298 = vector.extract_strided_slice %296 {offsets = [0, 32], sizes = [8, 32], strides = [1, 1]} : vector<8x64xf32> to vector<8x32xf32>
    %299 = vector.extract_strided_slice %288 {offsets = [0, 64], sizes = [8, 32], strides = [1, 1]} : vector<8x96xf32> to vector<8x32xf32>
    %300 = vector.extract_strided_slice %287 {offsets = [0, 64], sizes = [8, 32], strides = [1, 1]} : vector<8x96xf32> to vector<8x32xf32>
    %301 = arith.addf %300, %9 : vector<8x32xf32>
    %302 = arith.mulf %297, %301 : vector<8x32xf32>
    %303 = arith.addf %299, %302 : vector<8x32xf32>
    %304 = math.tanh %303 : vector<8x32xf32>
    %cst_60 = arith.constant 1.000000e+00 : f32
    %305 = vector.broadcast %cst_60 : f32 to vector<8x32xf32>
    %306 = arith.subf %305, %298 : vector<8x32xf32>
    %307 = arith.mulf %306, %304 : vector<8x32xf32>
    %308 = arith.mulf %298, %262 : vector<8x32xf32>
    %309 = arith.addf %307, %308 : vector<8x32xf32>
    %cst_61 = arith.constant dense<0.000000e+00> : vector<8x24xf32>
    %310 = tpu.matmul %286, %3, %cst_61 {dimension_numbers = #tpu.dot_dimension_numbers<[1], [0], [0], [1], [0, 0, 1, 1], [], []>} : vector<8x8xf32>, vector<8x24xf32>, vector<8x24xf32> -> vector<8x24xf32>
    %cst_62 = arith.constant dense<0.000000e+00> : vector<8x24xf32>
    %311 = tpu.matmul %309, %2, %cst_62 {dimension_numbers = #tpu.dot_dimension_numbers<[1], [0], [0], [1], [0, 0, 1, 1], [], []>} : vector<8x32xf32>, vector<32x24xf32>, vector<8x24xf32> -> vector<8x24xf32>
    %312 = arith.addf %311, %6 : vector<8x24xf32>
    %313 = vector.extract_strided_slice %312 {offsets = [0, 0], sizes = [8, 16], strides = [1, 1]} : vector<8x24xf32> to vector<8x16xf32>
    %314 = vector.extract_strided_slice %310 {offsets = [0, 0], sizes = [8, 16], strides = [1, 1]} : vector<8x24xf32> to vector<8x16xf32>
    %315 = arith.addf %313, %314 : vector<8x16xf32>
    %316 = arith.negf %315 : vector<8x16xf32>
    %317 = math.exp %316 : vector<8x16xf32>
    %cst_63 = arith.constant 1.000000e+00 : f32
    %318 = vector.broadcast %cst_63 : f32 to vector<8x16xf32>
    %319 = arith.addf %318, %317 : vector<8x16xf32>
    %320 = arith.divf %318, %319 : vector<8x16xf32>
    %321 = vector.extract_strided_slice %320 {offsets = [0, 0], sizes = [8, 8], strides = [1, 1]} : vector<8x16xf32> to vector<8x8xf32>
    %322 = vector.extract_strided_slice %320 {offsets = [0, 8], sizes = [8, 8], strides = [1, 1]} : vector<8x16xf32> to vector<8x8xf32>
    %323 = vector.extract_strided_slice %312 {offsets = [0, 16], sizes = [8, 8], strides = [1, 1]} : vector<8x24xf32> to vector<8x8xf32>
    %324 = vector.extract_strided_slice %310 {offsets = [0, 16], sizes = [8, 8], strides = [1, 1]} : vector<8x24xf32> to vector<8x8xf32>
    %325 = arith.addf %324, %12 : vector<8x8xf32>
    %326 = arith.mulf %321, %325 : vector<8x8xf32>
    %327 = arith.addf %323, %326 : vector<8x8xf32>
    %328 = math.tanh %327 : vector<8x8xf32>
    %cst_64 = arith.constant 1.000000e+00 : f32
    %329 = vector.broadcast %cst_64 : f32 to vector<8x8xf32>
    %330 = arith.subf %329, %322 : vector<8x8xf32>
    %331 = arith.mulf %330, %328 : vector<8x8xf32>
    %332 = arith.mulf %322, %286 : vector<8x8xf32>
    %333 = arith.addf %331, %332 : vector<8x8xf32>
    %cst_65 = arith.constant dense<0.000000e+00> : vector<8x96xf32>
    %334 = tpu.matmul %309, %1, %cst_65 {dimension_numbers = #tpu.dot_dimension_numbers<[1], [0], [0], [1], [0, 0, 1, 1], [], []>} : vector<8x32xf32>, vector<32x96xf32>, vector<8x96xf32> -> vector<8x96xf32>
    %335 = vector.extract_strided_slice %18 {offsets = [56, 0], sizes = [8, 96], strides = [1, 1]} : vector<64x96xf32> to vector<8x96xf32>
    %336 = vector.extract_strided_slice %335 {offsets = [0, 0], sizes = [8, 64], strides = [1, 1]} : vector<8x96xf32> to vector<8x64xf32>
    %337 = vector.extract_strided_slice %334 {offsets = [0, 0], sizes = [8, 64], strides = [1, 1]} : vector<8x96xf32> to vector<8x64xf32>
    %338 = arith.addf %336, %337 : vector<8x64xf32>
    %339 = arith.negf %338 : vector<8x64xf32>
    %340 = math.exp %339 : vector<8x64xf32>
    %cst_66 = arith.constant 1.000000e+00 : f32
    %341 = vector.broadcast %cst_66 : f32 to vector<8x64xf32>
    %342 = arith.addf %341, %340 : vector<8x64xf32>
    %343 = arith.divf %341, %342 : vector<8x64xf32>
    %344 = vector.extract_strided_slice %343 {offsets = [0, 0], sizes = [8, 32], strides = [1, 1]} : vector<8x64xf32> to vector<8x32xf32>
    %345 = vector.extract_strided_slice %343 {offsets = [0, 32], sizes = [8, 32], strides = [1, 1]} : vector<8x64xf32> to vector<8x32xf32>
    %346 = vector.extract_strided_slice %335 {offsets = [0, 64], sizes = [8, 32], strides = [1, 1]} : vector<8x96xf32> to vector<8x32xf32>
    %347 = vector.extract_strided_slice %334 {offsets = [0, 64], sizes = [8, 32], strides = [1, 1]} : vector<8x96xf32> to vector<8x32xf32>
    %348 = arith.addf %347, %9 : vector<8x32xf32>
    %349 = arith.mulf %344, %348 : vector<8x32xf32>
    %350 = arith.addf %346, %349 : vector<8x32xf32>
    %351 = math.tanh %350 : vector<8x32xf32>
    %cst_67 = arith.constant 1.000000e+00 : f32
    %352 = vector.broadcast %cst_67 : f32 to vector<8x32xf32>
    %353 = arith.subf %352, %345 : vector<8x32xf32>
    %354 = arith.mulf %353, %351 : vector<8x32xf32>
    %355 = arith.mulf %345, %309 : vector<8x32xf32>
    %356 = arith.addf %354, %355 : vector<8x32xf32>
    %cst_68 = arith.constant dense<0.000000e+00> : vector<8x24xf32>
    %357 = tpu.matmul %333, %3, %cst_68 {dimension_numbers = #tpu.dot_dimension_numbers<[1], [0], [0], [1], [0, 0, 1, 1], [], []>} : vector<8x8xf32>, vector<8x24xf32>, vector<8x24xf32> -> vector<8x24xf32>
    %cst_69 = arith.constant dense<0.000000e+00> : vector<8x24xf32>
    %358 = tpu.matmul %356, %2, %cst_69 {dimension_numbers = #tpu.dot_dimension_numbers<[1], [0], [0], [1], [0, 0, 1, 1], [], []>} : vector<8x32xf32>, vector<32x24xf32>, vector<8x24xf32> -> vector<8x24xf32>
    %359 = arith.addf %358, %6 : vector<8x24xf32>
    %360 = vector.extract_strided_slice %359 {offsets = [0, 0], sizes = [8, 16], strides = [1, 1]} : vector<8x24xf32> to vector<8x16xf32>
    %361 = vector.extract_strided_slice %357 {offsets = [0, 0], sizes = [8, 16], strides = [1, 1]} : vector<8x24xf32> to vector<8x16xf32>
    %362 = arith.addf %360, %361 : vector<8x16xf32>
    %363 = arith.negf %362 : vector<8x16xf32>
    %364 = math.exp %363 : vector<8x16xf32>
    %cst_70 = arith.constant 1.000000e+00 : f32
    %365 = vector.broadcast %cst_70 : f32 to vector<8x16xf32>
    %366 = arith.addf %365, %364 : vector<8x16xf32>
    %367 = arith.divf %365, %366 : vector<8x16xf32>
    %368 = vector.extract_strided_slice %367 {offsets = [0, 0], sizes = [8, 8], strides = [1, 1]} : vector<8x16xf32> to vector<8x8xf32>
    %369 = vector.extract_strided_slice %367 {offsets = [0, 8], sizes = [8, 8], strides = [1, 1]} : vector<8x16xf32> to vector<8x8xf32>
    %370 = vector.extract_strided_slice %359 {offsets = [0, 16], sizes = [8, 8], strides = [1, 1]} : vector<8x24xf32> to vector<8x8xf32>
    %371 = vector.extract_strided_slice %357 {offsets = [0, 16], sizes = [8, 8], strides = [1, 1]} : vector<8x24xf32> to vector<8x8xf32>
    %372 = arith.addf %371, %12 : vector<8x8xf32>
    %373 = arith.mulf %368, %372 : vector<8x8xf32>
    %374 = arith.addf %370, %373 : vector<8x8xf32>
    %375 = math.tanh %374 : vector<8x8xf32>
    %cst_71 = arith.constant 1.000000e+00 : f32
    %376 = vector.broadcast %cst_71 : f32 to vector<8x8xf32>
    %377 = arith.subf %376, %369 : vector<8x8xf32>
    %378 = arith.mulf %377, %375 : vector<8x8xf32>
    %379 = arith.mulf %369, %333 : vector<8x8xf32>
    %380 = arith.addf %378, %379 : vector<8x8xf32>
    %381 = tpu.concatenate %34, %74, %121, %168, %215, %262, %309, %356 in 1 : vector<8x32xf32>, vector<8x32xf32>, vector<8x32xf32>, vector<8x32xf32>, vector<8x32xf32>, vector<8x32xf32>, vector<8x32xf32>, vector<8x32xf32> -> vector<8x256xf32>
    %c0_72 = arith.constant 0 : index
    %c0_73 = arith.constant 0 : index
    %c0_74 = arith.constant 0 : index
    %382 = vector.load %arg10[%c0_72, %c0_73, %c0_74] : memref<1x8x256xf32, #tpu.memory_space<vmem>>, vector<1x8x256xf32>
    %383 = vector.shape_cast %382 : vector<1x8x256xf32> to vector<8x256xf32>
    %384 = vector.shape_cast %381 : vector<8x256xf32> to vector<1x8x256xf32>
    tpu.vector_store %arg10[%c0_72, %c0_73, %c0_74], %384 {strides = array<i32>} : memref<1x8x256xf32, #tpu.memory_space<vmem>>, vector<1x8x256xf32>,
    %385 = tpu.concatenate %51, %98, %145, %192, %239, %286, %333, %380 in 1 : vector<8x8xf32>, vector<8x8xf32>, vector<8x8xf32>, vector<8x8xf32>, vector<8x8xf32>, vector<8x8xf32>, vector<8x8xf32>, vector<8x8xf32> -> vector<8x64xf32>
    %c0_75 = arith.constant 0 : index
    %c0_76 = arith.constant 0 : index
    %c0_77 = arith.constant 0 : index
    %386 = vector.load %arg11[%c0_75, %c0_76, %c0_77] : memref<1x8x64xf32, #tpu.memory_space<vmem>>, vector<1x8x64xf32>
    %387 = vector.shape_cast %386 : vector<1x8x64xf32> to vector<8x64xf32>
    %388 = vector.shape_cast %385 : vector<8x64xf32> to vector<1x8x64xf32>
    tpu.vector_store %arg11[%c0_75, %c0_76, %c0_77], %388 {strides = array<i32>} : memref<1x8x64xf32, #tpu.memory_space<vmem>>, vector<1x8x64xf32>,
    return
  }
  func.func @transform_0(%arg0: i32) -> (i32, i32, i32) {
    %c0_i32 = arith.constant 0 : i32
    %c0_i32_0 = arith.constant 0 : i32
    %c0_i32_1 = arith.constant 0 : i32
    return %arg0, %c0_i32, %c0_i32_0 : i32, i32, i32
  }
  func.func @transform_1(%arg0: i32) -> (i32, i32) {
    %c0_i32 = arith.constant 0 : i32
    %c0_i32_0 = arith.constant 0 : i32
    %c0_i32_1 = arith.constant 0 : i32
    return %c0_i32, %c0_i32_0 : i32, i32
  }
  func.func @transform_2(%arg0: i32) -> (i32, i32) {
    %c0_i32 = arith.constant 0 : i32
    %c0_i32_0 = arith.constant 0 : i32
    %c0_i32_1 = arith.constant 0 : i32
    return %c0_i32, %c0_i32_0 : i32, i32
  }
  func.func @transform_3(%arg0: i32) -> (i32, i32) {
    %c0_i32 = arith.constant 0 : i32
    %c0_i32_0 = arith.constant 0 : i32
    %c0_i32_1 = arith.constant 0 : i32
    return %c0_i32, %c0_i32_0 : i32, i32
  }
  func.func @transform_4(%arg0: i32) -> (i32, i32) {
    %c0_i32 = arith.constant 0 : i32
    %c0_i32_0 = arith.constant 0 : i32
    %c0_i32_1 = arith.constant 0 : i32
    return %c0_i32, %c0_i32_0 : i32, i32
  }
  func.func @transform_5(%arg0: i32) -> (i32, i32) {
    %c0_i32 = arith.constant 0 : i32
    %c0_i32_0 = arith.constant 0 : i32
    %c0_i32_1 = arith.constant 0 : i32
    return %c0_i32, %c0_i32_0 : i32, i32
  }
  func.func @transform_6(%arg0: i32) -> (i32, i32) {
    %c0_i32 = arith.constant 0 : i32
    %c0_i32_0 = arith.constant 0 : i32
    %c0_i32_1 = arith.constant 0 : i32
    return %c0_i32, %c0_i32_0 : i32, i32
  }
  func.func @transform_7(%arg0: i32) -> (i32, i32) {
    %c0_i32 = arith.constant 0 : i32
    %c0_i32_0 = arith.constant 0 : i32
    %c0_i32_1 = arith.constant 0 : i32
    return %c0_i32, %c0_i32_0 : i32, i32
  }
  func.func @transform_8(%arg0: i32) -> (i32, i32) {
    %c0_i32 = arith.constant 0 : i32
    %c0_i32_0 = arith.constant 0 : i32
    %c0_i32_1 = arith.constant 0 : i32
    return %c0_i32, %c0_i32_0 : i32, i32
  }
  func.func @transform_9(%arg0: i32) -> (i32, i32, i32) {
    %c0_i32 = arith.constant 0 : i32
    %c0_i32_0 = arith.constant 0 : i32
    %c0_i32_1 = arith.constant 0 : i32
    return %arg0, %c0_i32, %c0_i32_0 : i32, i32, i32
  }
  func.func @transform_10(%arg0: i32) -> (i32, i32, i32) {
    %c0_i32 = arith.constant 0 : i32
    %c0_i32_0 = arith.constant 0 : i32
    %c0_i32_1 = arith.constant 0 : i32
    return %arg0, %c0_i32, %c0_i32_0 : i32, i32, i32
  }
}

</mosaic_0001>

<bundles_post_ra>
// kernel: _netd_forward_impl.1
= control target key start
LH: loop header
LB: loop body
LE: loop exit
PB: predicated region body
PF: predicated region fallthrough
CT: control target
= control target key end

     0   :  { %vm80_vm0 = vcmask 64512   ;;  %s2877_s22 = smov 64   ;;  %v2878_v18 = vmov 0.0|0.0   ;;  %vm2879_vm1 = vmmov 0   ;;  %v2880_v34 = vmov 0.0   ;;  %s2882_s30 = smov 16   ;;  %s3388_s1 = inlined_call_operand.vmem [shape: f32[8,96], index: 1, kind: input, shape index: {}]   ;;  %s3389_s0 = inlined_call_operand.vmem [shape: f32[1,64,8], index: 0, kind: input, shape index: {}]   ;;  %s3390_s3 = inlined_call_operand.vmem [shape: f32[1,96], index: 3, kind: input, shape index: {}]   ;;  %s3391_s4 = inlined_call_operand.vmem [shape: f32[1,32], index: 4, kind: input, shape index: {}]   ;;  %s3392_s2 = inlined_call_operand.vmem [shape: f32[32,96], index: 2, kind: input, shape index: {}]   ;;  %s3393_s5 = inlined_call_operand.vmem [shape: f32[32,24], index: 5, kind: input, shape index: {}]   ;;  %s3394_s7 = inlined_call_operand.vmem [shape: f32[1,24], index: 7, kind: input, shape index: {}]   ;;  %s3395_s8 = inlined_call_operand.vmem [shape: f32[1,8], index: 8, kind: input, shape index: {}]   ;;  %s3396_s6 = inlined_call_operand.vmem [shape: f32[8,24], index: 6, kind: input, shape index: {}]   ;;  %s3397_s9 = inlined_call_operand.vmem [shape: f32[1,8,256], index: 9, kind: output, shape index: {0}]   ;;  %s3398_s10 = inlined_call_operand.vmem [shape: f32[1,8,64], index: 10, kind: output, shape index: {1}]  }
   0x1   :  { %v34_v0 = vld [vmem:[%s3388_s1] sm:$0xff]  ;;  %v66_v2 = vld [vmem:[%s3389_s0 + $0x8] sm:$0xff]  ;;  %v71_v17 = vld [vmem:[%s3389_s0 + $0x30] sm:$0xff]  ;;  %vm232_vm2 = vcmask 261120   ;;  %s2886_s15 = smov 24   ;;  %s2887_s16 = smov 32  }
   0x2   :  { %v65_v1 = vld [vmem:[%s3389_s0] sm:$0xff]  ;;  %2461 = vmatprep.subr.mxu0 %v34_v0  ;;  %2765 = vmatprep.subr.mxu1 %v34_v0  ;;  %v70_v16 = vld [vmem:[%s3389_s0 + $0x28] sm:$0xff]  ;;  %v67_v24 = vld [vmem:[%s3389_s0 + $0x10] sm:$0xff]  ;;  %s2888_s17 = smov 40   ;;  %vm2293_vm3 = vcmask 130048   ;;  %vm2295_vm4 = vcmask 195584  }
   0x3   :  { %2463 = vmatprep.mubr.msk.f32.mxu0 %vm80_vm0, %v65_v1  ;;  %2462 = vmatpush3.msra.mxu0 %v34_v0  ;;  %v2959_v3 = vld [vmem:[%s3390_s3] ss:$0 sm:$0xff]  ;;  %v36_v20 = vld [vmem:[%s3392_s2 + $0x8] sm:$0xff]  ;;  %v72_v25 = vld [vmem:[%s3389_s0 + $0x38] sm:$0xff]  ;;  %s2889_s18 = smov 48   ;;  %vm2298_vm5 = vcmask 326656  }
   0x4   :  { %2464 = vmatmul.mubr.msk.f32.vlgmr.msra.gmra.mrb[0].mxu0 %vm80_vm0, %v66_v2  ;;  %2766 = vmatpush3.msra.mxu1 %v34_v0  ;;  %v2314_v10 = vld [vmem:[%s3391_s4] ss:$0 sm:$0xff]  ;;  %v40_v23 = vld [vmem:[%s3393_s5 + $0x8] sm:$0xff]  ;;  %v68_v27 = vld [vmem:[%s3389_s0 + $0x18] sm:$0xff]  ;;  %vm2265_vm6 = vcmask 785408   ;;  %vm2263_vm7 = vcmask 523264  }
   0x5   :  { %v69_v15 = vld [vmem:[%s3389_s0 + $0x20] sm:$0xff]  ;;  %2681 = vmatprep.subr.bf16.mxu1 %v2878_v18  ;;  %2675 = vmatprep.subr.bf16.mxu0 %v2878_v18  ;;  %v37_v28 = vld [vmem:[%s3392_s2 + $0x10] sm:$0xff]  ;;  %v38_v29 = vld [vmem:[%s3392_s2 + $0x18] sm:$0xff]  ;;  %vm2300_vm8 = vcmask 392192   ;;  %vm2302_vm9 = vcmask 457728  }
   0x6   :  { %2469 = vmatprep.mubr.msk.f32.mxu1 %vm80_vm0, %v69_v15  ;;  %v35_v19 = vld [vmem:[%s3392_s2] sm:$0xff]  ;;  %2466 = vmatprep.mubr.msk.f32.mxu0 %vm80_vm0, %v67_v24  ;;  %v3016_v30 = vpack.c.bf16 %v38_v29, %v37_v28  ;;  %v41_v31 = vld [vmem:[%s3393_s5 + $0x10] sm:$0xff]  ;;  %v42_v32 = vld [vmem:[%s3393_s5 + $0x18] sm:$0xff]  ;;  %s2881_s2 = smov 96  }
   0x7   :  { %v39_v21 = vld [vmem:[%s3393_s5] sm:$0xff]  ;;  %2470 = vmatmul.mubr.msk.f32.vlgmr.msra.gmra.mrb[0].mxu1 %vm80_vm0, %v70_v16  ;;  %v2990_v22 = vpack.c.bf16 %v36_v20, %v35_v19  ;;  %v3026_v33 = vpack.c.bf16 %v42_v32, %v41_v31 }
   0x8   :  { %v3001_v26 = vpack.c.bf16 %v40_v23, %v39_v21  ;;  %2472 = vmatprep.mubr.msk.f32.mxu1 %vm80_vm0, %v71_v17  ;;  %2467 = vmatmul.mubr.msk.f32.gmra.mrb[2].mxu0 %vm80_vm0, %v68_v27  ;;  %v3073_v46 = vld [vmem:[%s3394_s7] ss:$0 sm:$0xff] }
   0x9   :  { %2683 = vmatpush3.bf16.msra.mxu1 %v2990_v22  ;;  %2483 = vmatprep.mubr.msk.f32.mxu0 %vm2879_vm1, %v2880_v34  ;;  %v2315_v57 = vld [vmem:[%s3395_s8] ss:$0 sm:$0xff]  ;;  %s2883_s8 = smov 120  }
   0xa   :  { %2677 = vmatpush3.bf16.msra.mxu0 %v3001_v26  ;;  %2684 = vmatprep.subr.bf16.mxu1 %v2878_v18 }
   0xb   :  { %2473 = vmatmul.mubr.msk.f32.gmra.mrb[2].mxu1 %vm80_vm0, %v72_v25  ;;  %2678 = vmatprep.subr.bf16.mxu0 %v2878_v18 }
   0xc   :  { %2494 = vmatprep.mubr.msk.f32.mxu1 %vm2879_vm1, %v2880_v34 }
   0xd   :  { %2686 = vmatpush3.bf16.msra.mxu1 %v3016_v30 }
   0xe   :  { %2680 = vmatpush3.bf16.msra.mxu0 %v3026_v33  ;;  %2687 = vmatprep.subr.bf16.mxu1 %v2878_v18 }
   0xf   :  { %2497 = vmatprep.subr.mxu0 %v2880_v34 }
  0xd7   :  { %v2961_v4 = vpop.f32.mrb[0].mxu0 }
  0xd8   :  { %v171_v5 = vpop.f32.mrb[1].mxu0  ;;  %v177_v60 = vadd.f32 %v2961_v4, %v2959_v3 }
  0xd9   :  { %v172_v6 = vadd.f32 %v2959_v3, %v171_v5 }
  0xda   :  { %v3044_v39 = vpop.f32.mrb[0].mxu1 }
  0xdb   :  { %v2325_v7 = vmul.f32 -1.442695, %v172_v6  ;;  %v3046_v40 = vpop.f32.mrb[1].mxu1  ;;  %v3048_v41 = vpop.f32.mrb[2].mxu0 }
  0xdc   :  { %v3050_v42 = vpop.f32.mrb[3].mxu0 }
  0xdd   :  { %2780 = vpow2.f32 %v2325_v7 }
  0xde   :  { %v3052_v43 = vpop.f32.mrb[2].mxu1 }
  0xdf   :  { %v3054_v44 = vpop.f32.mrb[3].mxu1 }
  0xe7   :  { %v2781_v8 = vpop.eup %2780 }
  0xe8   :  { %v213_v9 = vadd.f32 1.0, %v2781_v8 }
  0xea   :  { %2782 = vrcp.f32 %v213_v9 }
  0xf4   :  { %v2783_v11 = vpop.eup %2782 }
  0xf5   :  { %v216_v12 = vmul.f32 %v2783_v11, %v2314_v10  ;;  %v223_v36 = vsub.f32 1.0, %v2783_v11 }
  0xf7   :  { %218 = vrot.lane.b32.xlu0 %v216_v12, %s2877_s22 }
 0x169   :  { %v219_v13 = vpop.permute.xlu0 %218 }
 0x16a   :  { %v221_v14 = vadd.f32 %v219_v13, %v172_v6 }
 0x16c   :  { %2784 = vtanh.f32 %v221_v14 }
 0x176   :  { %v2785_v35 = vpop.eup %2784 }
 0x177   :  { %225 = vrot.lane.b32.xlu0 %v2785_v35, %s2881_s2 }
 0x1e9   :  { %v226_v37 = vpop.permute.xlu0 %225 }
 0x1ea   :  { %v3039_v38 = vmul.f32 %v226_v37, %v223_v36 }
 0x1ec   :  { %230 = vrot.lane.b32.xlu1 %v3039_v38, %s2881_s2 }
 0x1f0   :  { %401 = vrot.lane.b32.xlu1 %v2314_v10, %s2877_s22  ;;  %v3091_v10 = vld [vmem:[%s3396_s6] sm:$0xff]  ;;  %s2884_s6 = smov 112  }
 0x25e   :  { %v3056_v45 = vpop.permute.xlu1 %230 }
 0x25f   :  { %2484 = vmatmul.mubr.msk.f32.vlgmr.msra.gmra.mrb[4].mxu0 %vm232_vm2, %v3056_v45  ;;  %2495 = vmatmul.mubr.msk.f32.vlgmr.msra.gmra.mrb[4].mxu1 %vm232_vm2, %v3056_v45 }
 0x260   :  { %2499 = vmatprep.mubr.msk.f32.mxu0 %vm2879_vm1, %v2880_v34  ;;  %2689 = vmatpush3.bf16.msra.mxu1 %v3001_v26 }
 0x261   :  { %2690 = vmatprep.subr.bf16.mxu1 %v2878_v18  ;;  %2510 = vmatprep.mubr.msk.f32.mxu1 %vm2879_vm1, %v2880_v34 }
 0x262   :  { %v3075_v47 = vpop.permute.xlu1 %401  ;;  %2498 = vmatpush3.msra.mxu0 %v3091_v10 }
 0x263   :  { %2693 = vmatprep.subr.bf16.mxu0 %v2878_v18 }
 0x264   :  { %2692 = vmatpush3.bf16.msra.mxu1 %v3026_v33 }
 0x265   :  { %2524 = vmatprep.subr.mxu1 %v2880_v34 }
 0x332   :  { %v301_v48 = vpop.f32.mrb[4].mxu0  ;;  %v390_v49 = vpop.f32.mrb[4].mxu1 }
 0x333   :  { %v302_v50 = vadd.f32 %v3073_v46, %v301_v48  ;;  %v2485_v51 = vpop.f32.mrb[5].mxu0  ;;  %v2496_v52 = vpop.f32.mrb[5].mxu1  ;;  %v404_v53 = vadd.f32 %v3075_v47, %v390_v49  ;;  %v394_v61 = vadd.f32 %v390_v49, %v177_v60 }
 0x335   :  { %v2327_v54 = vmul.f32 -1.442695, %v302_v50  ;;  %406 = vrot.lane.b32.xlu0 %v404_v53, %s2877_s22  ;;  %v2329_v62 = vmul.f32 -1.442695, %v394_v61 }
 0x337   :  { %2786 = vpow2.f32 %v2327_v54  ;;  %v182_v54 = vadd.f32 %v2959_v3, %v3050_v42 }
 0x341   :  { %v2787_v55 = vpop.eup %2786 }
 0x342   :  { %v308_v56 = vadd.f32 1.0, %v2787_v55 }
 0x344   :  { %2788 = vrcp.f32 %v308_v56 }
 0x345   :  { %2790 = vpow2.f32 %v2329_v62 }
 0x34e   :  { %v2789_v58 = vpop.eup %2788 }
 0x34f   :  { %v311_v59 = vmul.f32 %v2789_v58, %v2315_v57  ;;  %v2791_v63 = vpop.eup %2790  ;;  %v318_v12 = vsub.f32 1.0, %v2789_v58 }
 0x350   :  { %v398_v0 = vadd.f32 1.0, %v2791_v63 }
 0x351   :  { %313 = vrot.lane.b32.xlu1 %v311_v59, %s2882_s30 }
 0x352   :  { %2792 = vrcp.f32 %v398_v0 }
 0x35c   :  { %v2793_v1 = vpop.eup %2792 }
 0x35d   :  { %v416_v15 = vsub.f32 1.0, %v2793_v1  ;;  %v422_v17 = vmul.f32 %v2793_v1, %v3039_v38 }
 0x3a7   :  { %v407_v2 = vpop.permute.xlu0 %406 }
 0x3a8   :  { %v409_v5 = vmul.f32 %v2793_v1, %v407_v2 }
 0x3aa   :  { %411 = vrot.lane.b32.xlu0 %v409_v5, %s2877_s22 }
 0x3c3   :  { %v314_v6 = vpop.permute.xlu1 %313 }
 0x3c4   :  { %v316_v7 = vadd.f32 %v314_v6, %v302_v50 }
 0x3c6   :  { %2794 = vtanh.f32 %v316_v7 }
 0x3d0   :  { %v2795_v8 = vpop.eup %2794 }
 0x3d1   :  { %320 = vrot.lane.b32.xlu1 %v2795_v8, %s2883_s8 }
 0x41c   :  { %v412_v9 = vpop.permute.xlu0 %411 }
 0x41d   :  { %v414_v4 = vadd.f32 %v412_v9, %v177_v60 }
 0x41f   :  { %2796 = vtanh.f32 %v414_v4 }
 0x429   :  { %v2797_v11 = vpop.eup %2796 }
 0x42a   :  { %418 = vrot.lane.b32.xlu0 %v2797_v11, %s2881_s2 }
 0x443   :  { %v321_v13 = vpop.permute.xlu1 %320 }
 0x444   :  { %v3096_v14 = vmul.f32 %v321_v13, %v318_v12 }
 0x446   :  { %425 = vrot.lane.b32.xlu1 %v3096_v14, %s2883_s8 }
 0x44a   :  { %581 = vrot.lane.b32.xlu1 %v2315_v57, %s2882_s30 }
 0x49c   :  { %v419_v16 = vpop.permute.xlu0 %418 }
 0x49d   :  { %v421_v19 = vmul.f32 %v419_v16, %v416_v15 }
 0x49f   :  { %v3102_v20 = vadd.f32 %v422_v17, %v421_v19 }
 0x4a1   :  { %500 = vrot.lane.b32.xlu0 %v3102_v20, %s2881_s2 }
 0x4b8   :  { %v3106_v21 = vpop.permute.xlu1 %425 }
 0x4b9   :  { %2500 = vmatmul.mubr.msk.f32.vlgmr.msra.gmra.mrb[6].mxu0 %vm80_vm0, %v3106_v21 }
 0x4ba   :  { %2695 = vmatpush3.bf16.msra.mxu0 %v2990_v22  ;;  %2521 = vmatprep.mubr.msk.f32.mxu0 %vm2879_vm1, %v2880_v34 }
 0x4bb   :  { %2696 = vmatprep.subr.bf16.mxu0 %v2878_v18 }
 0x4bc   :  { %v3128_v24 = vpop.permute.xlu1 %581 }
 0x4be   :  { %2698 = vmatpush3.bf16.msra.mxu0 %v3016_v30 }
 0x4bf   :  { %2699 = vmatprep.subr.bf16.mxu0 %v2878_v18 }
 0x513   :  { %v501_v23 = vpop.permute.xlu0 %500 }
 0x514   :  { %2511 = vmatmul.mubr.msk.f32.vlgmr.msra.gmra.mrb[6].mxu1 %vm232_vm2, %v501_v23  ;;  %2522 = vmatmul.mubr.msk.f32.vlgmr.msra.gmra.mrb[8].mxu0 %vm232_vm2, %v501_v23 }
 0x515   :  { %2525 = vmatpush3.msra.mxu1 %v3091_v10  ;;  %2526 = vmatprep.mubr.msk.f32.mxu1 %vm2879_vm1, %v2880_v34 }
 0x516   :  { %2705 = vmatprep.subr.bf16.mxu1 %v2878_v18  ;;  %2701 = vmatpush3.bf16.msra.mxu0 %v3001_v26 }
 0x517   :  { %2702 = vmatprep.subr.bf16.mxu0 %v2878_v18  ;;  %2537 = vmatprep.mubr.msk.f32.mxu0 %vm2879_vm1, %v2880_v34 }
 0x51a   :  { %2704 = vmatpush3.bf16.msra.mxu0 %v3026_v33 }
 0x51b   :  { %2551 = vmatprep.subr.mxu0 %v2880_v34 }
 0x58c   :  { %v495_v25 = vpop.f32.mrb[6].mxu0 }
 0x58d   :  { %v2501_v27 = vpop.f32.mrb[7].mxu0  ;;  %v584_v28 = vadd.f32 %v3128_v24, %v495_v25 }
 0x58f   :  { %586 = vrot.lane.b32.xlu0 %v584_v28, %s2884_s6 }
 0x5e7   :  { %v570_v29 = vpop.f32.mrb[6].mxu1  ;;  %v670_v31 = vpop.f32.mrb[8].mxu0 }
 0x5e8   :  { %v571_v32 = vadd.f32 %v3073_v46, %v570_v29  ;;  %v681_v35 = vadd.f32 %v670_v31, %v3075_v47  ;;  %v2512_v36 = vpop.f32.mrb[7].mxu1  ;;  %v2523_v37 = vpop.f32.mrb[9].mxu0  ;;  %v674_v55 = vadd.f32 %v670_v31, %v182_v54 }
 0x5ea   :  { %v574_v38 = vadd.f32 %v571_v32, %v495_v25  ;;  %683 = vrot.lane.b32.xlu1 %v681_v35, %s2877_s22  ;;  %v2334_v56 = vmul.f32 -1.442695, %v674_v55 }
 0x5ec   :  { %v2332_v48 = vmul.f32 -1.442695, %v574_v38 }
 0x5ee   :  { %2798 = vpow2.f32 %v2332_v48 }
 0x5f8   :  { %v2799_v49 = vpop.eup %2798 }
 0x5f9   :  { %v578_v50 = vadd.f32 1.0, %v2799_v49 }
 0x5fb   :  { %2800 = vrcp.f32 %v578_v50 }
 0x5fc   :  { %2802 = vpow2.f32 %v2334_v56 }
 0x601   :  { %v587_v52 = vpop.permute.xlu0 %586 }
 0x605   :  { %v2801_v51 = vpop.eup %2800 }
 0x606   :  { %v589_v53 = vmul.f32 %v2801_v51, %v587_v52  ;;  %v2803_v57 = vpop.eup %2802  ;;  %v596_v5 = vsub.f32 1.0, %v2801_v51  ;;  %v602_v7 = vmul.f32 %v2801_v51, %v3096_v14  ;;  %v187_v51 = vadd.f32 %v3048_v41, %v2959_v3 }
 0x607   :  { %v678_v58 = vadd.f32 1.0, %v2803_v57 }
 0x608   :  { %591 = vrot.lane.b32.xlu0 %v589_v53, %s2882_s30 }
 0x609   :  { %2804 = vrcp.f32 %v678_v58 }
 0x613   :  { %v2805_v59 = vpop.eup %2804 }
 0x614   :  { %v693_v4 = vsub.f32 1.0, %v2805_v59  ;;  %v699_v12 = vmul.f32 %v2805_v59, %v3102_v20 }
 0x65c   :  { %v684_v60 = vpop.permute.xlu1 %683 }
 0x65d   :  { %v686_v61 = vmul.f32 %v2805_v59, %v684_v60 }
 0x65f   :  { %688 = vrot.lane.b32.xlu1 %v686_v61, %s2877_s22 }
 0x67a   :  { %v592_v62 = vpop.permute.xlu0 %591 }
 0x67b   :  { %v594_v63 = vadd.f32 %v592_v62, %v571_v32 }
 0x67d   :  { %2806 = vtanh.f32 %v594_v63 }
 0x687   :  { %v2807_v0 = vpop.eup %2806 }
 0x688   :  { %598 = vrot.lane.b32.xlu0 %v2807_v0, %s2883_s8 }
 0x6d1   :  { %v689_v1 = vpop.permute.xlu1 %688 }
 0x6d2   :  { %v691_v2 = vadd.f32 %v689_v1, %v182_v54 }
 0x6d4   :  { %2808 = vtanh.f32 %v691_v2 }
 0x6de   :  { %v2809_v42 = vpop.eup %2808 }
 0x6df   :  { %695 = vrot.lane.b32.xlu1 %v2809_v42, %s2881_s2 }
 0x6fa   :  { %v599_v6 = vpop.permute.xlu0 %598 }
 0x6fb   :  { %v601_v8 = vmul.f32 %v599_v6, %v596_v5 }
 0x6fd   :  { %v3142_v9 = vadd.f32 %v602_v7, %v601_v8 }
 0x6ff   :  { %702 = vrot.lane.b32.xlu0 %v3142_v9, %s2883_s8 }
 0x751   :  { %v696_v11 = vpop.permute.xlu1 %695 }
 0x752   :  { %v698_v13 = vmul.f32 %v696_v11, %v693_v4 }
 0x754   :  { %v3147_v15 = vadd.f32 %v699_v12, %v698_v13 }
 0x756   :  { %777 = vrot.lane.b32.xlu1 %v3147_v15, %s2881_s2 }
 0x771   :  { %v703_v16 = vpop.permute.xlu0 %702 }
 0x772   :  { %2527 = vmatmul.mubr.msk.f32.vlgmr.msra.gmra.mrb[8].mxu1 %vm80_vm0, %v703_v16 }
 0x773   :  { %2707 = vmatpush3.bf16.msra.mxu1 %v2990_v22  ;;  %2548 = vmatprep.mubr.msk.f32.mxu1 %vm2879_vm1, %v2880_v34 }
 0x774   :  { %2708 = vmatprep.subr.bf16.mxu1 %v2878_v18 }
 0x777   :  { %2710 = vmatpush3.bf16.msra.mxu1 %v3016_v30 }
 0x778   :  { %2711 = vmatprep.subr.bf16.mxu1 %v2878_v18 }
 0x7c8   :  { %v778_v14 = vpop.permute.xlu1 %777 }
 0x7c9   :  { %2538 = vmatmul.mubr.msk.f32.vlgmr.msra.gmra.mrb[10].mxu0 %vm232_vm2, %v778_v14  ;;  %2549 = vmatmul.mubr.msk.f32.vlgmr.msra.gmra.mrb[10].mxu1 %vm232_vm2, %v778_v14 }
 0x7ca   :  { %2552 = vmatpush3.msra.mxu0 %v3091_v10  ;;  %2553 = vmatprep.mubr.msk.f32.mxu0 %vm2879_vm1, %v2880_v34 }
 0x7cb   :  { %2717 = vmatprep.subr.bf16.mxu0 %v2878_v18  ;;  %2713 = vmatpush3.bf16.msra.mxu1 %v3001_v26 }
 0x7cc   :  { %2714 = vmatprep.subr.bf16.mxu1 %v2878_v18  ;;  %2564 = vmatprep.mubr.msk.f32.mxu1 %vm2879_vm1, %v2880_v34 }
 0x7cf   :  { %2716 = vmatpush3.bf16.msra.mxu1 %v3026_v33 }
 0x7d0   :  { %2578 = vmatprep.subr.mxu1 %v2880_v34 }
 0x845   :  { %v772_v17 = vpop.f32.mrb[8].mxu1 }
 0x846   :  { %v858_v19 = vadd.f32 %v772_v17, %v3128_v24  ;;  %v2528_v23 = vpop.f32.mrb[9].mxu1 }
 0x848   :  { %860 = vrot.lane.b32.xlu0 %v858_v19, %s2884_s6 }
 0x89c   :  { %v847_v25 = vpop.f32.mrb[10].mxu0  ;;  %v944_v27 = vpop.f32.mrb[10].mxu1 }
 0x89d   :  { %v848_v28 = vadd.f32 %v3073_v46, %v847_v25  ;;  %v955_v29 = vadd.f32 %v944_v27, %v3075_v47  ;;  %v2539_v31 = vpop.f32.mrb[11].mxu0  ;;  %v2550_v32 = vpop.f32.mrb[11].mxu1  ;;  %v948_v52 = vadd.f32 %v944_v27, %v187_v51 }
 0x89f   :  { %v851_v35 = vadd.f32 %v848_v28, %v772_v17  ;;  %957 = vrot.lane.b32.xlu1 %v955_v29, %s2877_s22  ;;  %v2339_v53 = vmul.f32 -1.442695, %v948_v52 }
 0x8a1   :  { %v2337_v36 = vmul.f32 -1.442695, %v851_v35 }
 0x8a3   :  { %2810 = vpow2.f32 %v2337_v36 }
 0x8ad   :  { %v2811_v37 = vpop.eup %2810 }
 0x8ae   :  { %v855_v38 = vadd.f32 1.0, %v2811_v37 }
 0x8b0   :  { %2812 = vrcp.f32 %v855_v38 }
 0x8b1   :  { %2814 = vpow2.f32 %v2339_v53 }
 0x8ba   :  { %v2813_v48 = vpop.eup %2812  ;;  %v861_v49 = vpop.permute.xlu0 %860 }
 0x8bb   :  { %v863_v50 = vmul.f32 %v2813_v48, %v861_v49  ;;  %v2815_v54 = vpop.eup %2814  ;;  %v870_v0 = vsub.f32 1.0, %v2813_v48  ;;  %v876_v2 = vmul.f32 %v2813_v48, %v3142_v9  ;;  %v192_v49 = vadd.f32 %v2959_v3, %v3046_v40 }
 0x8bc   :  { %v952_v55 = vadd.f32 1.0, %v2815_v54 }
 0x8bd   :  { %865 = vrot.lane.b32.xlu0 %v863_v50, %s2882_s30 }
 0x8be   :  { %2816 = vrcp.f32 %v952_v55 }
 0x8c8   :  { %v2817_v56 = vpop.eup %2816 }
 0x8c9   :  { %v967_v6 = vsub.f32 1.0, %v2817_v56  ;;  %v973_v8 = vmul.f32 %v2817_v56, %v3147_v15 }
 0x911   :  { %v958_v57 = vpop.permute.xlu1 %957 }
 0x912   :  { %v960_v58 = vmul.f32 %v2817_v56, %v958_v57 }
 0x914   :  { %962 = vrot.lane.b32.xlu1 %v960_v58, %s2877_s22 }
 0x92f   :  { %v866_v59 = vpop.permute.xlu0 %865 }
 0x930   :  { %v868_v60 = vadd.f32 %v866_v59, %v848_v28 }
 0x932   :  { %2818 = vtanh.f32 %v868_v60 }
 0x93c   :  { %v2819_v61 = vpop.eup %2818 }
 0x93d   :  { %872 = vrot.lane.b32.xlu0 %v2819_v61, %s2883_s8 }
 0x986   :  { %v963_v62 = vpop.permute.xlu1 %962 }
 0x987   :  { %v965_v63 = vadd.f32 %v963_v62, %v187_v51 }
 0x989   :  { %2820 = vtanh.f32 %v965_v63 }
 0x993   :  { %v2821_v41 = vpop.eup %2820 }
 0x994   :  { %969 = vrot.lane.b32.xlu1 %v2821_v41, %s2881_s2 }
 0x9af   :  { %v873_v1 = vpop.permute.xlu0 %872 }
 0x9b0   :  { %v875_v42 = vmul.f32 %v873_v1, %v870_v0 }
 0x9b2   :  { %v3182_v5 = vadd.f32 %v876_v2, %v875_v42 }
 0x9b4   :  { %976 = vrot.lane.b32.xlu0 %v3182_v5, %s2883_s8 }
 0xa06   :  { %v970_v7 = vpop.permute.xlu1 %969 }
 0xa07   :  { %v972_v4 = vmul.f32 %v970_v7, %v967_v6 }
 0xa09   :  { %v3187_v11 = vadd.f32 %v973_v8, %v972_v4 }
 0xa0b   :  { %1051 = vrot.lane.b32.xlu1 %v3187_v11, %s2881_s2 }
 0xa26   :  { %v977_v12 = vpop.permute.xlu0 %976 }
 0xa27   :  { %2554 = vmatmul.mubr.msk.f32.vlgmr.msra.gmra.mrb[12].mxu0 %vm80_vm0, %v977_v12 }
 0xa28   :  { %2719 = vmatpush3.bf16.msra.mxu0 %v2990_v22  ;;  %2575 = vmatprep.mubr.msk.f32.mxu0 %vm2879_vm1, %v2880_v34 }
 0xa29   :  { %2720 = vmatprep.subr.bf16.mxu0 %v2878_v18 }
 0xa2c   :  { %2722 = vmatpush3.bf16.msra.mxu0 %v3016_v30 }
 0xa2d   :  { %2723 = vmatprep.subr.bf16.mxu0 %v2878_v18 }
 0xa7d   :  { %v1052_v13 = vpop.permute.xlu1 %1051 }
 0xa7e   :  { %2565 = vmatmul.mubr.msk.f32.vlgmr.msra.gmra.mrb[12].mxu1 %vm232_vm2, %v1052_v13  ;;  %2576 = vmatmul.mubr.msk.f32.vlgmr.msra.gmra.mrb[14].mxu0 %vm232_vm2, %v1052_v13 }
 0xa7f   :  { %2579 = vmatpush3.msra.mxu1 %v3091_v10  ;;  %2580 = vmatprep.mubr.msk.f32.mxu1 %vm2879_vm1, %v2880_v34 }
 0xa80   :  { %2729 = vmatprep.subr.bf16.mxu1 %v2878_v18  ;;  %2725 = vmatpush3.bf16.msra.mxu0 %v3001_v26 }
 0xa81   :  { %2726 = vmatprep.subr.bf16.mxu0 %v2878_v18  ;;  %2591 = vmatprep.mubr.msk.f32.mxu0 %vm2879_vm1, %v2880_v34 }
 0xa84   :  { %2728 = vmatpush3.bf16.msra.mxu0 %v3026_v33 }
 0xa85   :  { %2605 = vmatprep.subr.mxu0 %v2880_v34 }
 0xafa   :  { %v1046_v16 = vpop.f32.mrb[12].mxu0 }
 0xafb   :  { %v1132_v14 = vadd.f32 %v1046_v16, %v3128_v24  ;;  %v2555_v17 = vpop.f32.mrb[13].mxu0 }
 0xafd   :  { %1134 = vrot.lane.b32.xlu0 %v1132_v14, %s2884_s6 }
 0xb51   :  { %v1121_v19 = vpop.f32.mrb[12].mxu1  ;;  %v1218_v23 = vpop.f32.mrb[14].mxu0 }
 0xb52   :  { %v1122_v25 = vadd.f32 %v3073_v46, %v1121_v19  ;;  %v1229_v27 = vadd.f32 %v1218_v23, %v3075_v47  ;;  %v2566_v28 = vpop.f32.mrb[13].mxu1  ;;  %v2577_v29 = vpop.f32.mrb[15].mxu0  ;;  %v1222_v50 = vadd.f32 %v1218_v23, %v192_v49 }
 0xb54   :  { %v1125_v31 = vadd.f32 %v1122_v25, %v1046_v16  ;;  %1231 = vrot.lane.b32.xlu1 %v1229_v27, %s2877_s22  ;;  %v2344_v51 = vmul.f32 -1.442695, %v1222_v50 }
 0xb56   :  { %v2342_v32 = vmul.f32 -1.442695, %v1125_v31 }
 0xb58   :  { %2822 = vpow2.f32 %v2342_v32 }
 0xb62   :  { %v2823_v35 = vpop.eup %2822 }
 0xb63   :  { %v1129_v36 = vadd.f32 1.0, %v2823_v35 }
 0xb65   :  { %2824 = vrcp.f32 %v1129_v36 }
 0xb66   :  { %2826 = vpow2.f32 %v2344_v51 }
 0xb6f   :  { %v2825_v37 = vpop.eup %2824  ;;  %v1135_v38 = vpop.permute.xlu0 %1134 }
 0xb70   :  { %v1137_v48 = vmul.f32 %v2825_v37, %v1135_v38  ;;  %v2827_v52 = vpop.eup %2826  ;;  %v1144_v62 = vsub.f32 1.0, %v2825_v37  ;;  %v1150_v41 = vmul.f32 %v2825_v37, %v3182_v5 }
 0xb71   :  { %v1226_v53 = vadd.f32 1.0, %v2827_v52 }
 0xb72   :  { %1139 = vrot.lane.b32.xlu0 %v1137_v48, %s2882_s30  ;;  %v197_v48 = vadd.f32 %v3044_v39, %v2959_v3 }
 0xb73   :  { %2828 = vrcp.f32 %v1226_v53 }
 0xb7d   :  { %v2829_v54 = vpop.eup %2828 }
 0xb7e   :  { %v1241_v2 = vsub.f32 1.0, %v2829_v54  ;;  %v1247_v6 = vmul.f32 %v2829_v54, %v3187_v11 }
 0xbc6   :  { %v1232_v55 = vpop.permute.xlu1 %1231 }
 0xbc7   :  { %v1234_v56 = vmul.f32 %v2829_v54, %v1232_v55 }
 0xbc9   :  { %1236 = vrot.lane.b32.xlu1 %v1234_v56, %s2877_s22 }
 0xbe4   :  { %v1140_v57 = vpop.permute.xlu0 %1139 }
 0xbe5   :  { %v1142_v58 = vadd.f32 %v1140_v57, %v1122_v25 }
 0xbe7   :  { %2830 = vtanh.f32 %v1142_v58 }
 0xbf1   :  { %v2831_v59 = vpop.eup %2830 }
 0xbf2   :  { %1146 = vrot.lane.b32.xlu0 %v2831_v59, %s2883_s8 }
 0xc3b   :  { %v1237_v60 = vpop.permute.xlu1 %1236 }
 0xc3c   :  { %v1239_v61 = vadd.f32 %v1237_v60, %v192_v49 }
 0xc3e   :  { %2832 = vtanh.f32 %v1239_v61 }
 0xc48   :  { %v2833_v40 = vpop.eup %2832 }
 0xc49   :  { %1243 = vrot.lane.b32.xlu1 %v2833_v40, %s2881_s2 }
 0xc64   :  { %v1147_v63 = vpop.permute.xlu0 %1146 }
 0xc65   :  { %v1149_v0 = vmul.f32 %v1147_v63, %v1144_v62 }
 0xc67   :  { %v3222_v1 = vadd.f32 %v1150_v41, %v1149_v0 }
 0xc69   :  { %1250 = vrot.lane.b32.xlu0 %v3222_v1, %s2883_s8 }
 0xcbb   :  { %v1244_v42 = vpop.permute.xlu1 %1243 }
 0xcbc   :  { %v1246_v7 = vmul.f32 %v1244_v42, %v1241_v2 }
 0xcbe   :  { %v3227_v8 = vadd.f32 %v1247_v6, %v1246_v7 }
 0xcc0   :  { %1325 = vrot.lane.b32.xlu1 %v3227_v8, %s2881_s2 }
 0xcdb   :  { %v1251_v4 = vpop.permute.xlu0 %1250 }
 0xcdc   :  { %2581 = vmatmul.mubr.msk.f32.vlgmr.msra.gmra.mrb[14].mxu1 %vm80_vm0, %v1251_v4 }
 0xcdd   :  { %2731 = vmatpush3.bf16.msra.mxu1 %v2990_v22  ;;  %2602 = vmatprep.mubr.msk.f32.mxu1 %vm2879_vm1, %v2880_v34 }
 0xcde   :  { %2732 = vmatprep.subr.bf16.mxu1 %v2878_v18 }
 0xce1   :  { %2734 = vmatpush3.bf16.msra.mxu1 %v3016_v30 }
 0xce2   :  { %2735 = vmatprep.subr.bf16.mxu1 %v2878_v18 }
 0xd32   :  { %v3238_v12 = vpop.permute.xlu1 %1325 }
 0xd33   :  { %2592 = vmatmul.mubr.msk.f32.vlgmr.msra.gmra.mrb[16].mxu0 %vm232_vm2, %v3238_v12  ;;  %2603 = vmatmul.mubr.msk.f32.vlgmr.msra.gmra.mrb[16].mxu1 %vm232_vm2, %v3238_v12 }
 0xd34   :  { %2606 = vmatpush3.msra.mxu0 %v3091_v10  ;;  %2607 = vmatprep.mubr.msk.f32.mxu0 %vm2879_vm1, %v2880_v34 }
 0xd35   :  { %2741 = vmatprep.subr.bf16.mxu0 %v2878_v18  ;;  %2737 = vmatpush3.bf16.msra.mxu1 %v3001_v26 }
 0xd36   :  { %2738 = vmatprep.subr.bf16.mxu1 %v2878_v18  ;;  %2618 = vmatprep.mubr.msk.f32.mxu1 %vm2879_vm1, %v2880_v34 }
 0xd39   :  { %2740 = vmatpush3.bf16.msra.mxu1 %v3026_v33 }
 0xd3a   :  { %2632 = vmatprep.subr.mxu1 %v2880_v34 }
 0xdaf   :  { %v1320_v13 = vpop.f32.mrb[14].mxu1 }
 0xdb0   :  { %v1406_v16 = vadd.f32 %v1320_v13, %v3128_v24  ;;  %v2582_v14 = vpop.f32.mrb[15].mxu1 }
 0xdb2   :  { %1408 = vrot.lane.b32.xlu0 %v1406_v16, %s2884_s6 }
 0xe06   :  { %v1395_v17 = vpop.f32.mrb[16].mxu0  ;;  %v1492_v19 = vpop.f32.mrb[16].mxu1 }
 0xe07   :  { %v1396_v23 = vadd.f32 %v3073_v46, %v1395_v17  ;;  %v1503_v25 = vadd.f32 %v1492_v19, %v3075_v47  ;;  %v2593_v27 = vpop.f32.mrb[17].mxu0  ;;  %v2604_v28 = vpop.f32.mrb[17].mxu1  ;;  %v1496_v49 = vadd.f32 %v1492_v19, %v197_v48 }
 0xe09   :  { %v1399_v29 = vadd.f32 %v1396_v23, %v1320_v13  ;;  %1505 = vrot.lane.b32.xlu1 %v1503_v25, %s2877_s22  ;;  %v2349_v50 = vmul.f32 -1.442695, %v1496_v49 }
 0xe0b   :  { %v2347_v31 = vmul.f32 -1.442695, %v1399_v29 }
 0xe0d   :  { %2834 = vpow2.f32 %v2347_v31 }
 0xe17   :  { %v2835_v32 = vpop.eup %2834 }
 0xe18   :  { %v1403_v35 = vadd.f32 1.0, %v2835_v32 }
 0xe1a   :  { %2836 = vrcp.f32 %v1403_v35 }
 0xe1b   :  { %2838 = vpow2.f32 %v2349_v50 }
 0xe24   :  { %v2837_v36 = vpop.eup %2836  ;;  %v1409_v37 = vpop.permute.xlu0 %1408 }
 0xe25   :  { %v1411_v38 = vmul.f32 %v2837_v36, %v1409_v37  ;;  %v2839_v51 = vpop.eup %2838  ;;  %v1418_v61 = vsub.f32 1.0, %v2837_v36  ;;  %v1424_v62 = vmul.f32 %v2837_v36, %v3222_v1 }
 0xe26   :  { %v1500_v52 = vadd.f32 1.0, %v2839_v51 }
 0xe27   :  { %1413 = vrot.lane.b32.xlu0 %v1411_v38, %s2882_s30 }
 0xe28   :  { %2840 = vrcp.f32 %v1500_v52 }
 0xe32   :  { %v2841_v53 = vpop.eup %2840 }
 0xe33   :  { %v1515_v0 = vsub.f32 1.0, %v2841_v53  ;;  %v1521_v42 = vmul.f32 %v2841_v53, %v3227_v8 }
 0xe7b   :  { %v1506_v54 = vpop.permute.xlu1 %1505 }
 0xe7c   :  { %v1508_v55 = vmul.f32 %v2841_v53, %v1506_v54 }
 0xe7e   :  { %1510 = vrot.lane.b32.xlu1 %v1508_v55, %s2877_s22 }
 0xe99   :  { %v1414_v56 = vpop.permute.xlu0 %1413 }
 0xe9a   :  { %v1416_v57 = vadd.f32 %v1414_v56, %v1396_v23 }
 0xe9c   :  { %2842 = vtanh.f32 %v1416_v57 }
 0xea6   :  { %v2843_v58 = vpop.eup %2842 }
 0xea7   :  { %1420 = vrot.lane.b32.xlu0 %v2843_v58, %s2883_s8 }
 0xef0   :  { %v1511_v59 = vpop.permute.xlu1 %1510 }
 0xef1   :  { %v1513_v60 = vadd.f32 %v1511_v59, %v197_v48  ;;  %v202_v48 = vadd.f32 %v2959_v3, %v3054_v44 }
 0xef3   :  { %2844 = vtanh.f32 %v1513_v60 }
 0xefd   :  { %v2845_v39 = vpop.eup %2844 }
 0xefe   :  { %1517 = vrot.lane.b32.xlu1 %v2845_v39, %s2881_s2 }
 0xf19   :  { %v1421_v40 = vpop.permute.xlu0 %1420 }
 0xf1a   :  { %v1423_v63 = vmul.f32 %v1421_v40, %v1418_v61 }
 0xf1c   :  { %v3266_v41 = vadd.f32 %v1424_v62, %v1423_v63 }
 0xf1e   :  { %1524 = vrot.lane.b32.xlu0 %v3266_v41, %s2883_s8 }
 0xf70   :  { %v1518_v2 = vpop.permute.xlu1 %1517 }
 0xf71   :  { %v1520_v6 = vmul.f32 %v1518_v2, %v1515_v0 }
 0xf73   :  { %v3271_v7 = vadd.f32 %v1521_v42, %v1520_v6 }
 0xf75   :  { %1599 = vrot.lane.b32.xlu1 %v3271_v7, %s2881_s2 }
 0xf90   :  { %v1525_v4 = vpop.permute.xlu0 %1524 }
 0xf91   :  { %2608 = vmatmul.mubr.msk.f32.vlgmr.msra.gmra.mrb[18].mxu0 %vm80_vm0, %v1525_v4 }
 0xf92   :  { %2743 = vmatpush3.bf16.msra.mxu0 %v2990_v22  ;;  %2629 = vmatprep.mubr.msk.f32.mxu0 %vm2879_vm1, %v2880_v34 }
 0xf93   :  { %2744 = vmatprep.subr.bf16.mxu0 %v2878_v18 }
 0xf96   :  { %2746 = vmatpush3.bf16.msra.mxu0 %v3016_v30 }
 0xf97   :  { %2747 = vmatprep.subr.bf16.mxu0 %v2878_v18 }
 0xfe7   :  { %v1600_v8 = vpop.permute.xlu1 %1599 }
 0xfe8   :  { %2619 = vmatmul.mubr.msk.f32.vlgmr.msra.gmra.mrb[18].mxu1 %vm232_vm2, %v1600_v8  ;;  %2630 = vmatmul.mubr.msk.f32.vlgmr.msra.gmra.mrb[20].mxu0 %vm232_vm2, %v1600_v8 }
 0xfe9   :  { %2633 = vmatpush3.msra.mxu1 %v3091_v10  ;;  %2634 = vmatprep.mubr.msk.f32.mxu1 %vm2879_vm1, %v2880_v34 }
 0xfea   :  { %2753 = vmatprep.subr.bf16.mxu1 %v2878_v18  ;;  %2749 = vmatpush3.bf16.msra.mxu0 %v3001_v26 }
 0xfeb   :  { %2750 = vmatprep.subr.bf16.mxu0 %v2878_v18  ;;  %2645 = vmatprep.mubr.msk.f32.mxu0 %vm2879_vm1, %v2880_v34 }
 0xfee   :  { %2752 = vmatpush3.bf16.msra.mxu0 %v3026_v33 }
 0xfef   :  { %2659 = vmatprep.subr.mxu0 %v2880_v34 }
0x1064   :  { %v1594_v13 = vpop.f32.mrb[18].mxu0 }
0x1065   :  { %v1680_v16 = vadd.f32 %v1594_v13, %v3128_v24  ;;  %v2609_v14 = vpop.f32.mrb[19].mxu0 }
0x1067   :  { %1682 = vrot.lane.b32.xlu0 %v1680_v16, %s2884_s6 }
0x10bb   :  { %v1669_v17 = vpop.f32.mrb[18].mxu1  ;;  %v1766_v19 = vpop.f32.mrb[20].mxu0 }
0x10bc   :  { %v1670_v23 = vadd.f32 %v3073_v46, %v1669_v17  ;;  %v1777_v25 = vadd.f32 %v1766_v19, %v3075_v47  ;;  %v2620_v27 = vpop.f32.mrb[19].mxu1  ;;  %v2631_v28 = vpop.f32.mrb[21].mxu0  ;;  %v1770_v49 = vadd.f32 %v1766_v19, %v202_v48 }
0x10be   :  { %v1673_v29 = vadd.f32 %v1670_v23, %v1594_v13  ;;  %1779 = vrot.lane.b32.xlu1 %v1777_v25, %s2877_s22  ;;  %v2354_v50 = vmul.f32 -1.442695, %v1770_v49 }
0x10c0   :  { %v2352_v31 = vmul.f32 -1.442695, %v1673_v29  ;;  %v2876_v29 = vld [vmem:[%s3390_s3] ss:$0 sm:$0xff]  ;;  %s2885_s3 = smov 8  }
0x10c2   :  { %2846 = vpow2.f32 %v2352_v31 }
0x10cc   :  { %v2847_v32 = vpop.eup %2846 }
0x10cd   :  { %v1677_v35 = vadd.f32 1.0, %v2847_v32 }
0x10cf   :  { %2848 = vrcp.f32 %v1677_v35 }
0x10d0   :  { %2850 = vpow2.f32 %v2354_v50 }
0x10d9   :  { %v2849_v36 = vpop.eup %2848  ;;  %v1683_v37 = vpop.permute.xlu0 %1682 }
0x10da   :  { %v1685_v38 = vmul.f32 %v2849_v36, %v1683_v37  ;;  %v2851_v51 = vpop.eup %2850  ;;  %v1692_v44 = vsub.f32 1.0, %v2849_v36  ;;  %v1698_v61 = vmul.f32 %v2849_v36, %v3266_v41 }
0x10db   :  { %v1774_v52 = vadd.f32 1.0, %v2851_v51 }
0x10dc   :  { %1687 = vrot.lane.b32.xlu0 %v1685_v38, %s2882_s30 }
0x10dd   :  { %2852 = vrcp.f32 %v1774_v52 }
0x10e7   :  { %v2853_v53 = vpop.eup %2852 }
0x10e8   :  { %v1789_v63 = vsub.f32 1.0, %v2853_v53  ;;  %v1795_v2 = vmul.f32 %v2853_v53, %v3271_v7 }
0x1130   :  { %v1780_v54 = vpop.permute.xlu1 %1779 }
0x1131   :  { %v1782_v55 = vmul.f32 %v2853_v53, %v1780_v54 }
0x1133   :  { %1784 = vrot.lane.b32.xlu1 %v1782_v55, %s2877_s22 }
0x114e   :  { %v1688_v56 = vpop.permute.xlu0 %1687 }
0x114f   :  { %v1690_v57 = vadd.f32 %v1688_v56, %v1670_v23 }
0x1151   :  { %2854 = vtanh.f32 %v1690_v57 }
0x115b   :  { %v2855_v58 = vpop.eup %2854 }
0x115c   :  { %1694 = vrot.lane.b32.xlu0 %v2855_v58, %s2883_s8 }
0x11a5   :  { %v1785_v59 = vpop.permute.xlu1 %1784 }
0x11a6   :  { %v1787_v60 = vadd.f32 %v1785_v59, %v202_v48 }
0x11a8   :  { %2856 = vtanh.f32 %v1787_v60 }
0x11b2   :  { %v2857_v3 = vpop.eup %2856 }
0x11b3   :  { %1791 = vrot.lane.b32.xlu1 %v2857_v3, %s2881_s2 }
0x11ce   :  { %v1695_v39 = vpop.permute.xlu0 %1694 }
0x11cf   :  { %v1697_v40 = vmul.f32 %v1695_v39, %v1692_v44 }
0x11d1   :  { %v3306_v62 = vadd.f32 %v1698_v61, %v1697_v40 }
0x11d3   :  { %1798 = vrot.lane.b32.xlu0 %v3306_v62, %s2883_s8 }
0x1225   :  { %v1792_v0 = vpop.permute.xlu1 %1791 }
0x1226   :  { %v1794_v42 = vmul.f32 %v1792_v0, %v1789_v63 }
0x1228   :  { %v3311_v6 = vadd.f32 %v1795_v2, %v1794_v42 }
0x122a   :  { %1873 = vrot.lane.b32.xlu1 %v3311_v6, %s2881_s2 }
0x1245   :  { %v1799_v4 = vpop.permute.xlu0 %1798 }
0x1246   :  { %2635 = vmatmul.mubr.msk.f32.vlgmr.msra.gmra.mrb[20].mxu1 %vm80_vm0, %v1799_v4 }
0x1247   :  { %2755 = vmatpush3.bf16.msra.mxu1 %v2990_v22  ;;  %2656 = vmatprep.mubr.msk.f32.mxu1 %vm2879_vm1, %v2880_v34 }
0x1248   :  { %2756 = vmatprep.subr.bf16.mxu1 %v2878_v18 }
0x124b   :  { %2758 = vmatpush3.bf16.msra.mxu1 %v3016_v30 }
0x124c   :  { %2759 = vmatprep.subr.bf16.mxu1 %v2878_v18 }
0x129c   :  { %v1874_v8 = vpop.permute.xlu1 %1873 }
0x129d   :  { %2646 = vmatmul.mubr.msk.f32.vlgmr.msra.gmra.mrb[22].mxu0 %vm232_vm2, %v1874_v8  ;;  %2657 = vmatmul.mubr.msk.f32.vlgmr.msra.gmra.mrb[22].mxu1 %vm232_vm2, %v1874_v8 }
0x129e   :  { %2660 = vmatpush3.msra.mxu0 %v3091_v10  ;;  %2661 = vmatprep.mubr.msk.f32.mxu0 %vm2879_vm1, %v2880_v34 }
0x129f   :  { %2761 = vmatpush3.bf16.msra.mxu1 %v3001_v26  ;;  %2672 = vmatprep.mubr.msk.f32.mxu1 %vm2879_vm1, %v2880_v34 }
0x12a0   :  { %2762 = vmatprep.subr.bf16.mxu1 %v2878_v18 }
0x12a3   :  { %2764 = vmatpush3.bf16.msra.mxu1 %v3026_v33 }
0x1319   :  { %v1868_v22 = vpop.f32.mrb[20].mxu1 }
0x131a   :  { %v1954_v30 = vadd.f32 %v1868_v22, %v3128_v24  ;;  %v2636_v13 = vpop.f32.mrb[21].mxu1 }
0x131c   :  { %1956 = vrot.lane.b32.xlu0 %v1954_v30, %s2884_s6 }
0x1370   :  { %v1943_v16 = vpop.f32.mrb[22].mxu0  ;;  %v2040_v10 = vpop.f32.mrb[22].mxu1 }
0x1371   :  { %v1944_v14 = vadd.f32 %v3073_v46, %v1943_v16  ;;  %v2051_v17 = vadd.f32 %v2040_v10, %v3075_v47  ;;  %v2647_v26 = vpop.f32.mrb[23].mxu0  ;;  %v2658_v19 = vpop.f32.mrb[23].mxu1  ;;  %v207_v47 = vadd.f32 %v2876_v29, %v3052_v43 }
0x1373   :  { %v1947_v23 = vadd.f32 %v1944_v14, %v1868_v22  ;;  %2053 = vrot.lane.b32.xlu1 %v2051_v17, %s2877_s22  ;;  %v2044_v31 = vadd.f32 %v2040_v10, %v207_v47 }
0x1375   :  { %v2357_v18 = vmul.f32 -1.442695, %v1947_v23  ;;  %v2359_v32 = vmul.f32 -1.442695, %v2044_v31 }
0x1377   :  { %2858 = vpow2.f32 %v2357_v18 }
0x1381   :  { %v2859_v33 = vpop.eup %2858 }
0x1382   :  { %v1951_v34 = vadd.f32 1.0, %v2859_v33 }
0x1384   :  { %2860 = vrcp.f32 %v1951_v34 }
0x1385   :  { %2862 = vpow2.f32 %v2359_v32 }
0x138e   :  { %v2861_v25 = vpop.eup %2860  ;;  %v1957_v27 = vpop.permute.xlu0 %1956 }
0x138f   :  { %v1959_v28 = vmul.f32 %v2861_v25, %v1957_v27  ;;  %v2863_v35 = vpop.eup %2862  ;;  %v1966_v54 = vsub.f32 1.0, %v2861_v25  ;;  %v1972_v56 = vmul.f32 %v2861_v25, %v3306_v62 }
0x1390   :  { %v2048_v36 = vadd.f32 1.0, %v2863_v35  ;;  %v2262_v35 = vsel %vm232_vm2, %v3056_v45, %v3102_v20 }
0x1391   :  { %1961 = vrot.lane.b32.xlu0 %v1959_v28, %s2882_s30 }
0x1392   :  { %2864 = vrcp.f32 %v2048_v36 }
0x139c   :  { %v2865_v37 = vpop.eup %2864 }
0x139d   :  { %v2063_v59 = vsub.f32 1.0, %v2865_v37  ;;  %v2069_v3 = vmul.f32 %v2865_v37, %v3311_v6 }
0x13e5   :  { %v2054_v38 = vpop.permute.xlu1 %2053 }
0x13e6   :  { %v2056_v48 = vmul.f32 %v2865_v37, %v2054_v38 }
0x13e8   :  { %2058 = vrot.lane.b32.xlu1 %v2056_v48, %s2877_s22 }
0x1403   :  { %v1962_v49 = vpop.permute.xlu0 %1961 }
0x1404   :  { %v1964_v50 = vadd.f32 %v1962_v49, %v1944_v14 }
0x1406   :  { %2866 = vtanh.f32 %v1964_v50 }
0x1410   :  { %v2867_v51 = vpop.eup %2866 }
0x1411   :  { %1968 = vrot.lane.b32.xlu0 %v2867_v51, %s2883_s8 }
0x145a   :  { %v2059_v52 = vpop.permute.xlu1 %2058 }
0x145b   :  { %v2061_v53 = vadd.f32 %v2059_v52, %v207_v47  ;;  %v2267_v47 = vsel %vm232_vm2, %v3238_v12, %v3271_v7 }
0x145d   :  { %2868 = vtanh.f32 %v2061_v53 }
0x1467   :  { %v2869_v43 = vpop.eup %2868 }
0x1468   :  { %2065 = vrot.lane.b32.xlu1 %v2869_v43, %s2881_s2 }
0x1483   :  { %v1969_v55 = vpop.permute.xlu0 %1968 }
0x1484   :  { %v1971_v57 = vmul.f32 %v1969_v55, %v1966_v54 }
0x1486   :  { %v1973_v58 = vadd.f32 %v1972_v56, %v1971_v57 }
0x1488   :  { %2072 = vrot.lane.b32.xlu0 %v1973_v58, %s2883_s8 }
0x14da   :  { %v2066_v60 = vpop.permute.xlu1 %2065 }
0x14db   :  { %v2068_v44 = vmul.f32 %v2066_v60, %v2063_v59 }
0x14dd   :  { %v2070_v39 = vadd.f32 %v2069_v3, %v2068_v44 }
0x14df   :  { %2147 = vrot.lane.b32.xlu1 %v2070_v39, %s2881_s2 }
0x14fa   :  { %v2073_v61 = vpop.permute.xlu0 %2072 }
0x14fb   :  { %2662 = vmatmul.mubr.msk.f32.vlgmr.msra.gmra.mrb[24].mxu0 %vm80_vm0, %v2073_v61 }
0x1551   :  { %v2148_v40 = vpop.permute.xlu1 %2147 }
0x1552   :  { %2673 = vmatmul.mubr.msk.f32.vlgmr.msra.gmra.mrb[24].mxu1 %vm232_vm2, %v2148_v40 }
0x15ce   :  { %v2142_v63 = vpop.f32.mrb[24].mxu0 }
0x15cf   :  { %v2228_v0 = vadd.f32 %v2142_v63, %v3128_v24  ;;  %v2663_v2 = vpop.f32.mrb[25].mxu0 }
0x15d1   :  { %2230 = vrot.lane.b32.xlu0 %v2228_v0, %s2884_s6 }
0x1625   :  { %v2217_v42 = vpop.f32.mrb[24].mxu1 }
0x1626   :  { %v2218_v4 = vadd.f32 %v3073_v46, %v2217_v42  ;;  %v2674_v8 = vpop.f32.mrb[25].mxu1 }
0x1628   :  { %v2221_v22 = vadd.f32 %v2218_v4, %v2142_v63 }
0x162a   :  { %v2362_v30 = vmul.f32 -1.442695, %v2221_v22 }
0x162c   :  { %2870 = vpow2.f32 %v2362_v30 }
0x1636   :  { %v2871_v13 = vpop.eup %2870 }
0x1637   :  { %v2225_v16 = vadd.f32 1.0, %v2871_v13 }
0x1639   :  { %2872 = vrcp.f32 %v2225_v16 }
0x1643   :  { %v2873_v10 = vpop.eup %2872  ;;  %v2231_v14 = vpop.permute.xlu0 %2230 }
0x1644   :  { %v2233_v17 = vmul.f32 %v2873_v10, %v2231_v14  ;;  %v2246_v18 = vmul.f32 %v2873_v10, %v1973_v58 }
0x1646   :  { %2235 = vrot.lane.b32.xlu1 %v2233_v17, %s2882_s30 }
0x164a   :  { %2273 = vrot.lane.b32.xlu1 %v3182_v5, %s2885_s3 }
0x164e   :  { %2279 = vrot.lane.b32.xlu1 %v3266_v41, %s2886_s15  ;;  %v2240_v41 = vsub.f32 1.0, %v2873_v10 }
0x1652   :  { %2249 = vrot.lane.b32.xlu1 %v3147_v15, %s2887_s16 }
0x1656   :  { %2285 = vrot.lane.b32.xlu1 %v1973_v58, %s2888_s17 }
0x165a   :  { %2259 = vrot.lane.b32.xlu1 %v2070_v39, %s2877_s22 }
0x16b8   :  { %v2236_v46 = vpop.permute.xlu1 %2235 }
0x16b9   :  { %v2238_v24 = vadd.f32 %v2236_v46, %v2218_v4 }
0x16bb   :  { %2874 = vtanh.f32 %v2238_v24 }
0x16bc   :  { %v2274_v15 = vpop.permute.xlu1 %2273 }
0x16c0   :  { %v2280_v5 = vpop.permute.xlu1 %2279 }
0x16c4   :  { %v2250_v23 = vpop.permute.xlu1 %2249 }
0x16c5   :  { %v2875_v26 = vpop.eup %2874  ;;  %v2264_v36 = vsel %vm2263_vm7, %v2262_v35, %v2250_v23 }
0x16c6   :  { %2242 = vrot.lane.b32.xlu0 %v2875_v26, %s2883_s8 }
0x16ca   :  { %2276 = vrot.lane.b32.xlu0 %v3222_v1, %s2882_s30  ;;  %v2292_v1 = vsel %vm80_vm0, %v3106_v21, %v3142_v9 }
0x16ce   :  { %2282 = vrot.lane.b32.xlu0 %v3306_v62, %s2887_s16  ;;  %v2294_v62 = vsel %vm2293_vm3, %v2292_v1, %v2274_v15 }
0x16d2   :  { %2256 = vrot.lane.b32.xlu0 %v3311_v6, %s2887_s16 }
0x16d6   :  { %2252 = vrot.lane.b32.xlu0 %v3187_v11, %s2877_s22  ;;  %v2286_v11 = vpop.permute.xlu1 %2285 }
0x16da   :  { %v2260_v21 = vpop.permute.xlu1 %2259 }
0x1738   :  { %v2243_v19 = vpop.permute.xlu0 %2242 }
0x1739   :  { %v2245_v33 = vmul.f32 %v2243_v19, %v2240_v41 }
0x173b   :  { %v2247_v34 = vadd.f32 %v2246_v18, %v2245_v33 }
0x173c   :  { %v2277_v25 = vpop.permute.xlu0 %2276 }
0x173d   :  { %v2296_v6 = vsel %vm2295_vm4, %v2294_v62, %v2277_v25  ;;  %2289 = vrot.lane.b32.xlu0 %v2247_v34, %s2889_s18 }
0x173e   :  { %v2297_v28 = vsel %vm232_vm2, %v2296_v6, %v2280_v5 }
0x1740   :  { %v2283_v27 = vpop.permute.xlu0 %2282 }
0x1741   :  { %v2299_v29 = vsel %vm2298_vm5, %v2297_v28, %v2283_v27 }
0x1742   :  { %v2301_v7 = vsel %vm2300_vm8, %v2299_v29, %v2286_v11 }
0x1744   :  { %v2257_v31 = vpop.permute.xlu0 %2256 }
0x1745   :  { %v2268_v9 = vsel %vm2263_vm7, %v2267_v47, %v2257_v31 }
0x1746   :  { %v2269_v32 = vsel %vm2265_vm6, %v2268_v9, %v2260_v21 }
0x1747   :  { %2271 = vst [vmem:[%s3397_s9 + $0x8] sm:$0xff] %v2269_v32 }
0x1748   :  { %v2253_v37 = vpop.permute.xlu0 %2252 }
0x1749   :  { %v2266_v38 = vsel %vm2265_vm6, %v2264_v36, %v2253_v37 }
0x174a   :  { %2270 = vst [vmem:[%s3397_s9] sm:$0xff] %v2266_v38 }
0x17af   :  { %v2290_v12 = vpop.permute.xlu0 %2289 }
0x17b0   :  { %v2303_v48 = vsel %vm2302_vm9, %v2301_v7, %v2290_v12 }
0x17b1   :  { %2304 = vst.msk [vmem:[%s3398_s10] sm:$0xff] %vm2263_vm7, %v2303_v48 }

</bundles_post_ra>
